<compile_context>
chip_gen: v5e
topology: v5e:2x2
jax: 0.10.0
libtpu: 0.0.40
codegen_flags: <defaults>
</compile_context>

<pallas_src>
import functools

import jax
import jax.numpy as jnp
from jax.experimental import pallas as pl
from jax.experimental.pallas import tpu as pltpu


def _conv_bn_silu_kernel(x_ref, w_ref, shift_ref, o_ref, *, k, stride):
    # x_ref:     (1, HP, WP, Cin)       padded NHWC image (bf16), resident per n
    # w_ref:     (k*k*Cin, Coutp)       BN-scale-folded, flattened weights (bf16)
    # shift_ref: (1, Coutp)             beta + (conv_bias - mean) * scale (f32)
    # o_ref:     (1, th, OW, Coutp)     output row tile
    _, th, ow, coutp = o_ref.shape
    cin = x_ref.shape[-1]

    i = pl.program_id(1)
    row0 = pl.multiple_of(i * (th * stride), th * stride)

    # Build the im2col LHS once per tile by concatenating the k*k shifted
    # windows along the channel (lane) axis -> (th, ow, k*k*cin).
    taps = []
    for kh in range(k):
        for kw in range(k):
            if stride == 1:
                win = x_ref[0, pl.ds(row0 + kh, th), pl.ds(kw, ow), :]
            else:
                win = x_ref[0, pl.ds(row0 + kh, th, stride=stride),
                            pl.ds(kw, ow, stride=stride), :]
            taps.append(win)
    lhs = jnp.concatenate(taps, axis=-1).reshape(th * ow, k * k * cin)

    # Single MXU matmul per tile, K = k*k*Cin, f32 accumulation.
    acc = jnp.dot(lhs, w_ref[...], preferred_element_type=jnp.float32)

    # Epilogue in f32: folded BN shift + SiLU.  (Padded Cout lanes, if any,
    # have shift == 0 so SiLU(0) == 0 keeps them zero.)
    z = acc + shift_ref[...]
    y = z * jax.nn.sigmoid(z)
    o_ref[...] = y.reshape(1, th, ow, coutp).astype(o_ref.dtype)


def _pick_row_tile(OH, OW, HP, WP, Cin, Coutp, k, budget_bytes=24 * 1024 * 1024):
    """Largest divisor of OH whose VMEM estimate fits the budget."""
    bf16, f32 = 2, 4
    fixed = (2 * HP * WP * Cin * bf16            # padded image, double-buffered
             + 2 * k * k * Cin * Coutp * bf16    # folded weights, double-buffered
             + 2 * Coutp * f32)                  # shift
    per_row = (2 * OW * Coutp * f32              # output block, double-buffered
               + OW * k * k * Cin * bf16         # im2col LHS (in-kernel value)
               + 2 * OW * Coutp * f32)           # f32 acc + epilogue temp
    for th in range(OH, 0, -1):
        if OH % th == 0 and fixed + th * per_row <= budget_bytes:
            return th
    return 1


def conv2d_bn_silu_forward(x_nchw, params, *, kernel_size, stride,
                           compute_dtype=jnp.bfloat16, row_tile=None,
                           out_dtype=jnp.float32):
    """Fused Conv2d(k, stride, padding=(k-1)//2) + BN(eval) + SiLU.

    x_nchw: (N, Cin, H, W) float32 (PyTorch layout).
    Returns (N, Cout, OH, OW) in `out_dtype` (PyTorch layout).
    """
    w = params["conv_w"]          # (Cout, Cin, k, k)  OIHW
    b = params["conv_b"]          # (Cout,)
    gamma = params["bn_gamma"]
    beta = params["bn_beta"]
    mean = params["bn_mean"]
    var = params["bn_var"]
    eps = params["bn_eps"]

    k = kernel_size
    P = (k - 1) // 2
    N, Cin, H, W = x_nchw.shape
    Cout = w.shape[0]
    OH = (H + 2 * P - k) // stride + 1
    OW = (W + 2 * P - k) // stride + 1
    HP, WP = H + 2 * P, W + 2 * P

    # Lane padding of Cout only pays off once Cout is reasonably wide; for
    # small Cout keep the exact channel count (block == full array extent).
    if Cout >= 64 and Cout % 128 != 0:
        Coutp = pl.cdiv(Cout, 128) * 128
    else:
        Coutp = Cout

    th = _pick_row_tile(OH, OW, HP, WP, Cin, Coutp, k) if row_tile is None else row_tile
    assert OH % th == 0, "row_tile must divide OH"

    # Fold conv bias + BN into per-channel scale/shift; fold scale into weights.
    scale = gamma / jnp.sqrt(var + eps)
    shift = beta + (b - mean) * scale

    # OIHW -> (kh, kw, Cin, Cout) * scale -> pad Cout -> flatten to (k*k*Cin, Coutp).
    # Flattened row index = (kh*k + kw)*Cin + c, matching the in-kernel tap order.
    w_hwio = jnp.transpose(w, (2, 3, 1, 0)) * scale[None, None, None, :]
    w_hwio = jnp.pad(w_hwio, ((0, 0), (0, 0), (0, 0), (0, Coutp - Cout)))
    w_flat = w_hwio.reshape(k * k * Cin, Coutp).astype(compute_dtype)
    shift_p = jnp.pad(shift, (0, Coutp - Cout)).reshape(1, Coutp).astype(jnp.float32)

    # Layout glue (TODO(synk): keep NHWC end-to-end + in-kernel halo to drop these).
    x = jnp.transpose(x_nchw, (0, 2, 3, 1)).astype(compute_dtype)   # NHWC, bf16
    xp = jnp.pad(x, ((0, 0), (P, P), (P, P), (0, 0)))

    kernel = functools.partial(_conv_bn_silu_kernel, k=k, stride=stride)

    out = pl.pallas_call(
        kernel,
        out_shape=jax.ShapeDtypeStruct((N, OH, OW, Coutp), out_dtype),
        grid_spec=pltpu.PrefetchScalarGridSpec(
            num_scalar_prefetch=0,
            grid=(N, OH // th),
            in_specs=[
                # Full padded image per batch element; index_map is constant in
                # the row axis so the pipeline fetches it once per n.
                pl.BlockSpec((1, HP, WP, Cin), lambda n, i: (n, 0, 0, 0)),
                pl.BlockSpec((k * k * Cin, Coutp), lambda n, i: (0, 0)),
                pl.BlockSpec((1, Coutp), lambda n, i: (0, 0)),
            ],
            out_specs=pl.BlockSpec((1, th, OW, Coutp), lambda n, i: (n, i, 0, 0)),
        ),
        compiler_params=pltpu.CompilerParams(
            # No cross-iteration reduction: both axes are independent output
            # tiles, so let v7x megacore shard either of them.
            dimension_semantics=("parallel", "parallel"),
            vmem_limit_bytes=48 * 1024 * 1024,
        ),
    )(xp, w_flat, shift_p)

    if Coutp != Cout:
        out = out[..., :Cout]                  # drop Cout padding lanes
    return jnp.transpose(out, (0, 3, 1, 2))    # NHWC -> NCHW (PyTorch convention)


def _reference(x_nchw, params, *, kernel_size, stride):
    """Plain-JAX f32 reference (conv + BN eval + SiLU)."""
    P = (kernel_size - 1) // 2
    y = jax.lax.conv_general_dilated(
        x_nchw, params["conv_w"],
        window_strides=(stride, stride),
        padding=((P, P), (P, P)),
        dimension_numbers=("NCHW", "OIHW", "NCHW"),
    )
    y = y + params["conv_b"][None, :, None, None]
    scale = params["bn_gamma"] / jnp.sqrt(params["bn_var"] + params["bn_eps"])
    y = (y - params["bn_mean"][None, :, None, None]) * scale[None, :, None, None] \
        + params["bn_beta"][None, :, None, None]
    return y * jax.nn.sigmoid(y)


def _reference_matched(x_nchw, params, *, kernel_size, stride, compute_dtype):
    """Reference with the SAME folding + operand dtype as the Pallas path."""
    P = (kernel_size - 1) // 2
    scale = params["bn_gamma"] / jnp.sqrt(params["bn_var"] + params["bn_eps"])
    shift = params["bn_beta"] + (params["conv_b"] - params["bn_mean"]) * scale
    w_folded = (params["conv_w"] * scale[:, None, None, None]).astype(compute_dtype)
    y = jax.lax.conv_general_dilated(
        x_nchw.astype(compute_dtype), w_folded,
        window_strides=(stride, stride),
        padding=((P, P), (P, P)),
        dimension_numbers=("NCHW", "OIHW", "NCHW"),
        preferred_element_type=jnp.float32,
    )
    y = y + shift[None, :, None, None]
    return y * jax.nn.sigmoid(y)


def init_params(key, in1, out1, kernel_size):
    ks = jax.random.split(key, 6)
    fan_in = in1 * kernel_size * kernel_size
    bound = 1.0 / jnp.sqrt(fan_in)
    return {
        "conv_w": jax.random.uniform(
            ks[0], (out1, in1, kernel_size, kernel_size),
            minval=-bound, maxval=bound, dtype=jnp.float32),
        "conv_b": jax.random.uniform(
            ks[1], (out1,), minval=-bound, maxval=bound, dtype=jnp.float32),
        "bn_gamma": jax.random.uniform(
            ks[2], (out1,), minval=0.5, maxval=1.5, dtype=jnp.float32),
        "bn_beta": jax.random.uniform(
            ks[3], (out1,), minval=-0.5, maxval=0.5, dtype=jnp.float32),
        "bn_mean": jax.random.normal(ks[4], (out1,), dtype=jnp.float32) * 0.1,
        "bn_var": jax.random.uniform(
            ks[5], (out1,), minval=0.5, maxval=1.5, dtype=jnp.float32),
        "bn_eps": jnp.float32(1e-5),
    }


if __name__ == "__main__":
    key = jax.random.PRNGKey(0)
    k_param, k_x = jax.random.split(key)

    # conv2d_bn_silu(in1=4, out1=8, kernel_size=3, stride=1)
    in1, out1, kernel_size, stride = 4, 8, 3, 1
    params = init_params(k_param, in1, out1, kernel_size)

    x = jax.random.normal(k_x, (2, in1, 16, 16), dtype=jnp.float32)  # NCHW

    fwd = jax.jit(functools.partial(
        conv2d_bn_silu_forward, kernel_size=kernel_size, stride=stride))

    y = jax.block_until_ready(fwd(x, params))

    # Matched-precision reference (same BN folding + bf16 operands, f32 accum):
    y_matched = jax.block_until_ready(_reference_matched(
        x, params, kernel_size=kernel_size, stride=stride,
        compute_dtype=jnp.bfloat16))
    # Full-f32 PyTorch-semantics reference (loose tol covers bf16 operand cast):
    y_f32 = jax.block_until_ready(
        _reference(x, params, kernel_size=kernel_size, stride=stride))

    assert y.shape == (2, out1, 16, 16)
    assert jnp.allclose(y, y_matched, atol=2e-3, rtol=2e-3)
    assert jnp.allclose(y, y_f32, atol=1e-1, rtol=1e-1)
    print("KERNEL_OK")
</pallas_src>

<mosaic_0001>
module attributes {stable_mosaic.version = 11 : i64} {
  func.func @_conv_bn_silu_kernel(%arg0: i32, %arg1: i32, %arg2: memref<1x18x18x4xbf16, #tpu.memory_space<vmem>>, %arg3: memref<36x8xbf16, #tpu.memory_space<vmem>>, %arg4: memref<1x8xf32, #tpu.memory_space<vmem>>, %arg5: memref<1x16x16x8xf32, #tpu.memory_space<vmem>>) attributes {dimension_semantics = [#tpu.dimension_semantics<parallel>, #tpu.dimension_semantics<parallel>], iteration_bounds = array<i64: 2, 1>, scalar_prefetch = 0 : i64, scratch_operands = 0 : i64, tpu.core_type = #tpu.core_type<tc>, window_params = [{transform_indices = @transform_0, window_bounds = array<i64: 1, 18, 18, 4>}, {pipeline_mode = #tpu.pipeline_mode<synchronous>, transform_indices = @transform_1, window_bounds = array<i64: 36, 8>}, {pipeline_mode = #tpu.pipeline_mode<synchronous>, transform_indices = @transform_2, window_bounds = array<i64: 1, 8>}, {transform_indices = @transform_3, window_bounds = array<i64: 1, 16, 16, 8>}]} {
    %c16_i32 = arith.constant 16 : i32
    %0 = arith.muli %arg1, %c16_i32 : i32
    %1 = tpu.assume_multiple %0, 16 : i32
    %c0_i32 = arith.constant 0 : i32
    %2 = arith.addi %1, %c0_i32 : i32
    %c0 = arith.constant 0 : index
    %3 = arith.index_cast %2 : i32 to index
    %c0_0 = arith.constant 0 : index
    %c0_1 = arith.constant 0 : index
    %4 = vector.load %arg2[%c0, %3, %c0_0, %c0_1] : memref<1x18x18x4xbf16, #tpu.memory_space<vmem>>, vector<1x16x16x4xbf16>
    %5 = vector.shape_cast %4 : vector<1x16x16x4xbf16> to vector<16x16x4xbf16>
    %c0_i32_2 = arith.constant 0 : i32
    %6 = arith.addi %1, %c0_i32_2 : i32
    %c0_3 = arith.constant 0 : index
    %7 = arith.index_cast %6 : i32 to index
    %c1 = arith.constant 1 : index
    %c0_4 = arith.constant 0 : index
    %8 = vector.load %arg2[%c0_3, %7, %c1, %c0_4] : memref<1x18x18x4xbf16, #tpu.memory_space<vmem>>, vector<1x16x16x4xbf16>
    %9 = vector.shape_cast %8 : vector<1x16x16x4xbf16> to vector<16x16x4xbf16>
    %c0_i32_5 = arith.constant 0 : i32
    %10 = arith.addi %1, %c0_i32_5 : i32
    %c0_6 = arith.constant 0 : index
    %11 = arith.index_cast %10 : i32 to index
    %c2 = arith.constant 2 : index
    %c0_7 = arith.constant 0 : index
    %12 = vector.load %arg2[%c0_6, %11, %c2, %c0_7] : memref<1x18x18x4xbf16, #tpu.memory_space<vmem>>, vector<1x16x16x4xbf16>
    %13 = vector.shape_cast %12 : vector<1x16x16x4xbf16> to vector<16x16x4xbf16>
    %c1_i32 = arith.constant 1 : i32
    %14 = arith.addi %1, %c1_i32 : i32
    %c0_8 = arith.constant 0 : index
    %15 = arith.index_cast %14 : i32 to index
    %c0_9 = arith.constant 0 : index
    %c0_10 = arith.constant 0 : index
    %16 = vector.load %arg2[%c0_8, %15, %c0_9, %c0_10] : memref<1x18x18x4xbf16, #tpu.memory_space<vmem>>, vector<1x16x16x4xbf16>
    %17 = vector.shape_cast %16 : vector<1x16x16x4xbf16> to vector<16x16x4xbf16>
    %c1_i32_11 = arith.constant 1 : i32
    %18 = arith.addi %1, %c1_i32_11 : i32
    %c0_12 = arith.constant 0 : index
    %19 = arith.index_cast %18 : i32 to index
    %c1_13 = arith.constant 1 : index
    %c0_14 = arith.constant 0 : index
    %20 = vector.load %arg2[%c0_12, %19, %c1_13, %c0_14] : memref<1x18x18x4xbf16, #tpu.memory_space<vmem>>, vector<1x16x16x4xbf16>
    %21 = vector.shape_cast %20 : vector<1x16x16x4xbf16> to vector<16x16x4xbf16>
    %c1_i32_15 = arith.constant 1 : i32
    %22 = arith.addi %1, %c1_i32_15 : i32
    %c0_16 = arith.constant 0 : index
    %23 = arith.index_cast %22 : i32 to index
    %c2_17 = arith.constant 2 : index
    %c0_18 = arith.constant 0 : index
    %24 = vector.load %arg2[%c0_16, %23, %c2_17, %c0_18] : memref<1x18x18x4xbf16, #tpu.memory_space<vmem>>, vector<1x16x16x4xbf16>
    %25 = vector.shape_cast %24 : vector<1x16x16x4xbf16> to vector<16x16x4xbf16>
    %c2_i32 = arith.constant 2 : i32
    %26 = arith.addi %1, %c2_i32 : i32
    %c0_19 = arith.constant 0 : index
    %27 = arith.index_cast %26 : i32 to index
    %c0_20 = arith.constant 0 : index
    %c0_21 = arith.constant 0 : index
    %28 = vector.load %arg2[%c0_19, %27, %c0_20, %c0_21] : memref<1x18x18x4xbf16, #tpu.memory_space<vmem>>, vector<1x16x16x4xbf16>
    %29 = vector.shape_cast %28 : vector<1x16x16x4xbf16> to vector<16x16x4xbf16>
    %c2_i32_22 = arith.constant 2 : i32
    %30 = arith.addi %1, %c2_i32_22 : i32
    %c0_23 = arith.constant 0 : index
    %31 = arith.index_cast %30 : i32 to index
    %c1_24 = arith.constant 1 : index
    %c0_25 = arith.constant 0 : index
    %32 = vector.load %arg2[%c0_23, %31, %c1_24, %c0_25] : memref<1x18x18x4xbf16, #tpu.memory_space<vmem>>, vector<1x16x16x4xbf16>
    %33 = vector.shape_cast %32 : vector<1x16x16x4xbf16> to vector<16x16x4xbf16>
    %c2_i32_26 = arith.constant 2 : i32
    %34 = arith.addi %1, %c2_i32_26 : i32
    %c0_27 = arith.constant 0 : index
    %35 = arith.index_cast %34 : i32 to index
    %c2_28 = arith.constant 2 : index
    %c0_29 = arith.constant 0 : index
    %36 = vector.load %arg2[%c0_27, %35, %c2_28, %c0_29] : memref<1x18x18x4xbf16, #tpu.memory_space<vmem>>, vector<1x16x16x4xbf16>
    %37 = vector.shape_cast %36 : vector<1x16x16x4xbf16> to vector<16x16x4xbf16>
    %38 = tpu.concatenate %5, %9, %13, %17, %21, %25, %29, %33, %37 in 2 : vector<16x16x4xbf16>, vector<16x16x4xbf16>, vector<16x16x4xbf16>, vector<16x16x4xbf16>, vector<16x16x4xbf16>, vector<16x16x4xbf16>, vector<16x16x4xbf16>, vector<16x16x4xbf16>, vector<16x16x4xbf16> -> vector<16x16x36xbf16>
    %39 = vector.shape_cast %38 : vector<16x16x36xbf16> to vector<256x36xbf16>
    %c0_30 = arith.constant 0 : index
    %c0_31 = arith.constant 0 : index
    %40 = vector.load %arg3[%c0_30, %c0_31] : memref<36x8xbf16, #tpu.memory_space<vmem>>, vector<36x8xbf16>
    %cst = arith.constant dense<0.000000e+00> : vector<256x8xf32>
    %41 = tpu.matmul %39, %40, %cst {dimension_numbers = #tpu.dot_dimension_numbers<[1], [0], [0], [1], [0, 0, 1, 1], [], []>} : vector<256x36xbf16>, vector<36x8xbf16>, vector<256x8xf32> -> vector<256x8xf32>
    %c0_32 = arith.constant 0 : index
    %c0_33 = arith.constant 0 : index
    %42 = vector.load %arg4[%c0_32, %c0_33] : memref<1x8xf32, #tpu.memory_space<vmem>>, vector<1x8xf32>
    %43 = vector.broadcast %42 : vector<1x8xf32> to vector<256x8xf32>
    %44 = arith.addf %41, %43 : vector<256x8xf32>
    %45 = arith.negf %44 : vector<256x8xf32>
    %46 = math.exp %45 : vector<256x8xf32>
    %cst_34 = arith.constant 1.000000e+00 : f32
    %47 = vector.broadcast %cst_34 : f32 to vector<256x8xf32>
    %48 = arith.addf %47, %46 : vector<256x8xf32>
    %49 = arith.divf %47, %48 : vector<256x8xf32>
    %50 = arith.mulf %44, %49 : vector<256x8xf32>
    %51 = vector.shape_cast %50 : vector<256x8xf32> to vector<1x16x16x8xf32>
    %c0_35 = arith.constant 0 : index
    %c0_36 = arith.constant 0 : index
    %c0_37 = arith.constant 0 : index
    %c0_38 = arith.constant 0 : index
    %52 = vector.load %arg5[%c0_35, %c0_36, %c0_37, %c0_38] : memref<1x16x16x8xf32, #tpu.memory_space<vmem>>, vector<1x16x16x8xf32>
    tpu.vector_store %arg5[%c0_35, %c0_36, %c0_37, %c0_38], %51 {strides = array<i32>} : memref<1x16x16x8xf32, #tpu.memory_space<vmem>>, vector<1x16x16x8xf32>,
    return
  }
  func.func @transform_0(%arg0: i32, %arg1: i32) -> (i32, i32, i32, i32) {
    %c0_i32 = arith.constant 0 : i32
    %c0_i32_0 = arith.constant 0 : i32
    %c0_i32_1 = arith.constant 0 : i32
    %c0_i32_2 = arith.constant 0 : i32
    return %arg0, %c0_i32, %c0_i32_0, %c0_i32_1 : i32, i32, i32, i32
  }
  func.func @transform_1(%arg0: i32, %arg1: i32) -> (i32, i32) {
    %c0_i32 = arith.constant 0 : i32
    %c0_i32_0 = arith.constant 0 : i32
    %c0_i32_1 = arith.constant 0 : i32
    return %c0_i32, %c0_i32_0 : i32, i32
  }
  func.func @transform_2(%arg0: i32, %arg1: i32) -> (i32, i32) {
    %c0_i32 = arith.constant 0 : i32
    %c0_i32_0 = arith.constant 0 : i32
    %c0_i32_1 = arith.constant 0 : i32
    return %c0_i32, %c0_i32_0 : i32, i32
  }
  func.func @transform_3(%arg0: i32, %arg1: i32) -> (i32, i32, i32, i32) {
    %c0_i32 = arith.constant 0 : i32
    %c0_i32_0 = arith.constant 0 : i32
    %c0_i32_1 = arith.constant 0 : i32
    return %arg0, %arg1, %c0_i32, %c0_i32_0 : i32, i32, i32, i32
  }
}

</mosaic_0001>

<bundles_post_ra>
// kernel: conv2d_bn_silu_forward.1
= control target key start
LH: loop header
LB: loop body
LE: loop exit
PB: predicated region body
PF: predicated region fallthrough
CT: control target
= control target key end

     0   :  { %s3780_s12 = smov 0   ;;  %s3782_s13 = smov 0   ;;  %s5304_s0 = inlined_call_operand.vmem [shape: bf16[2,18,18,4], index: 0, kind: input, shape index: {}]   ;;  %s5305_s1 = inlined_call_operand.vmem [shape: bf16[36,8], index: 1, kind: input, shape index: {}]   ;;  %s5306_s2 = inlined_call_operand.vmem [shape: f32[1,8], index: 2, kind: input, shape index: {}]   ;;  %s5307_s3 = inlined_call_operand.vmem [shape: f32[2,16,16,8], index: 3, kind: output, shape index: {}]  }
   0x1   :  { %s3784_s14 = smov 0  }
   0x2 LB: > { %s25_s15 = sadd.s32 1, %s3746_s13  ;;  %p3094_p0 = scmp.ge.s32.totalorder %s3750_s14, 1  ;;  %s3750_s14 = sphi %s3784_s14, %s13_s14   ;;  %s3746_s13 = sphi %s3782_s13, %s5321_s13   ;;  %s3742_s12 = sphi %s3780_s12, %s5320_s12  }
   0x3   : > { %p27_p1 = scmp.ge.s32.totalorder %s25_s15, 2  ;;  %p151_p2 = scmp.lt.s32.totalorder %s3750_s14, 3 }
   0x5   : > { %s5323_s15 = smov (%p27_p1, %s25_s15), 0  ;;  %p152_p3 = pnand %p3094_p0, %p151_p2 }
   0x7   : > { %155 = sbr.rel (%p152_p3) target bundleno = 652 (0x28c), region = 32 }
   0xc   : > { %p180_p4 = scmp.lt.s32.totalorder %s3742_s12, 1  ;;  %vm529_vm0 = vsmask.f32 7424  ;;  %s3752_s20 = smov 4   ;;  %vm802_vm1 = vcmask 1046528   ;;  %vm1907_vm2 = vcmask 31744  }
   0xd   : > { %s3753_s21 = smov 8   ;;  %s3754_s22 = smov 12   ;;  %vm1940_vm3 = vcmask 64512   ;;  %vm1973_vm4 = vcmask 97280   ;;  %vm2228_vm5 = vcmask 1041408   ;;  %vm2006_vm6 = vcmask 130048  }
   0xe   : > { %s5325_s12 = smov (!%p180_p4, %s3742_s12), 1  ;;  %s3755_s23 = smov 20   ;;  %vm2039_vm7 = vcmask 162816   ;;  %vm2072_vm8 = vcmask 195584   ;;  %vm2105_vm9 = vcmask 228352   ;;  %vm2138_vm10 = vcmask 261120  }
   0xf   : > { %s3487_s16 = smul.u32 216, %s5325_s12  ;;  %s3756_s24 = smov 16   ;;  %vm2195_vm11 = vcmask 293888  }
  0x10   : > { %s3757_s25 = smov 24   ;;  %s3758_s26 = smov 32  }
  0x11   : > { %s3804_s19 = scalar_lea.vmem %s5304_s0, %s3487_s16  ;;  %s3759_s27 = smov 28  }
  0x12   : > { %v3807_v0 = vld [vmem:[%s3804_s19 + $0x30] sm:$0xff]   ;;  %v237_v1 = vld [vmem:[%s3804_s19 + $0x38] sm:$0x1]  ;;  %v235_v6 = vld [vmem:[%s3804_s19 + $0x20] sm:$0x1]  ;;  %s3284_s9 = sshll.u32 %s5325_s12, 8 }
  0x13   : > { %v3811_v2 = vld [vmem:[%s3804_s19 + $0x18] sm:$0xff]   ;;  %v501_v3 = vunpack.c.l.b16 %v237_v1  ;;  %v579_v4 = vshrl.u32 %v3807_v0, 16  ;;  %v581_v5 = vshll.u32 %v3807_v0, 16  ;;  %v3288_v8 = vld [vmem:[%s3804_s19] sm:$0xff]   ;;  %v499_v9 = vunpack.c.l.b16 %v235_v6  ;;  %v233_v11 = vld [vmem:[%s3804_s19 + $0x8] sm:$0x1]  ;;  %s4922_s12 = scalar_lea.vmem %s5307_s3, %s3284_s9 }
  0x14   : > { %v555_v7 = vshrl.u32 %v3811_v2, 16  ;;  %v557_v10 = vshll.u32 %v3811_v2, 16  ;;  %v531_v12 = vshrl.u32 %v3288_v8, 16  ;;  %v533_v13 = vshll.u32 %v3288_v8, 16  ;;  %v3821_v14 = vld [vmem:[%s3804_s19 + $0x60] sm:$0xff]   ;;  %v3851_v42 = vld [vmem:[%s3804_s19 + $0x48] sm:$0xff]  }
  0x15   : > { %v3823_v15 = vpack.c.b16 %v501_v3, %v501_v3  ;;  %v583_v16 = vrot.slane %v581_v5, 1  ;;  %v497_v17 = vunpack.c.l.b16 %v233_v11  ;;  %v241_v18 = vld [vmem:[%s3804_s19 + $0x68] sm:$0x1]  ;;  %v627_v19 = vshrl.u32 %v3821_v14, 16  ;;  %v236_v30 = vld [vmem:[%s3804_s19 + $0x2c] sm:$0x1] }
  0x16   : > { %v3827_v20 = vpack.c.b16 %v499_v9, %v499_v9  ;;  %v559_v21 = vrot.slane %v557_v10, 1  ;;  %v535_v22 = vrot.slane %v533_v13, 1  ;;  %v505_v23 = vunpack.c.l.b16 %v241_v18  ;;  %v3830_v24 = vld [vmem:[%s3804_s19 + $0x24] sm:$0xff]   ;;  %v239_v35 = vld [vmem:[%s3804_s19 + $0x50] sm:$0x1]  ;;  %v3863_v50 = vld [vmem:[%s3804_s19 + $0x3c] sm:$0xff]  }
  0x17   : > { %v3833_v25 = vld [vmem:[%s3804_s19 + $0x24] sm:$0xf0]  ;;  %v3835_v26 = vor.u32 %v583_v16, %v579_v4  ;;  %v586_v27 = vshll.u32 %v3823_v15, 16  ;;  %v3838_v28 = vpack.c.b16 %v497_v17, %v497_v17  ;;  %v629_v29 = vshll.u32 %v3821_v14, 16  ;;  %v3866_v51 = vld [vmem:[%s3804_s19 + $0x3c] sm:$0xf0] }
  0x18   : > { %v3842_v31 = vor.u32 %v559_v21, %v555_v7  ;;  %v562_v32 = vshll.u32 %v3827_v20, 16  ;;  %v536_v33 = vor.u32 %v535_v22, %v531_v12  ;;  %v3845_v34 = vpack.c.b16 %v505_v23, %v505_v23  ;;  %v238_v56 = vld [vmem:[%s3804_s19 + $0x44] sm:$0x1]  ;;  %v3876_v57 = vld [vmem:[%s3804_s19 + $0x54] sm:$0xff]   ;;  %v240_v3 = vld [vmem:[%s3804_s19 + $0x5c] sm:$0x1] }
  0x19   : > { %5310 = vst [vmem:[#allocation2_spill] sm:$0xff] %v3835_v26  ;;  %v588_v36 = vrot.slane %v586_v27, 1  ;;  %v538_v37 = vshll.u32 %v3838_v28, 16  ;;  %v631_v38 = vrot.slane %v629_v29, 1  ;;  %v500_v41 = vunpack.c.l.b16 %v236_v30  ;;  %v3879_v58 = vld [vmem:[%s3804_s19 + $0x54] sm:$0xf0] }
  0x1a   : > { %v564_v39 = vrot.slane %v562_v32, 1  ;;  %v634_v40 = vshll.u32 %v3845_v34, 16  ;;  %v503_v46 = vunpack.c.l.b16 %v239_v35  ;;  %v603_v54 = vshrl.u32 %v3851_v42, 16  ;;  %v3890_v4 = vld [vmem:[%s3804_s19 + $0xc] sm:$0xff]   ;;  %v234_v16 = vld [vmem:[%s3804_s19 + $0x14] sm:$0x1] }
  0x1b   : > { %v589_v43 = vsel %vm529_vm0, %v3835_v26, %v588_v36  ;;  %v540_v44 = vrot.slane %v538_v37, 1  ;;  %v3855_v45 = vor.u32 %v631_v38, %v627_v19  ;;  %v3860_v49 = vpack.c.b16 %v500_v41, %v500_v41  ;;  %v3893_v5 = vld [vmem:[%s3804_s19 + $0xc] sm:$0xf0]  ;;  %v3905_v21 = vld [vmem:[%s3804_s19 + $0x84] sm:$0xff]   ;;  %v244_v36 = vld [vmem:[%s3804_s19 + $0x8c] sm:$0x1] }
  0x1c   : > { %730 = vrot.lane.b32.xlu2 %v589_v43, %s3752_s20  ;;  %v565_v47 = vsel %vm529_vm0, %v3842_v31, %v564_v39  ;;  %v636_v48 = vrot.slane %v634_v40, 1  ;;  %v3870_v53 = vpack.c.b16 %v503_v46, %v503_v46  ;;  %v605_v55 = vshll.u32 %v3851_v42, 16  ;;  %v3908_v22 = vld [vmem:[%s3804_s19 + $0x84] sm:$0xf0]  ;;  %v243_v43 = vld [vmem:[%s3804_s19 + $0x80] sm:$0x1] }
  0x1d   : > { %5311 = vst [vmem:[#allocation3_spill] sm:$0xff] %v3855_v45  ;;  %726 = vrot.lane.b32.xlu1 %v565_v47, %s3752_s20  ;;  %v541_v52 = vsel %vm529_vm0, %v536_v33, %v540_v44  ;;  %v567_v60 = vshrl.u32 %v3830_v24, 16  ;;  %v569_v61 = vshll.u32 %v3830_v24, 16  ;;  %v574_v62 = vshll.u32 %v3860_v49, 16  ;;  %v3660_v26 = vld [vmem:[%s3804_s19 + $0x24] sm:$0xe] }
  0x1e   : > { %722 = vrot.lane.b32.xlu0 %v541_v52, %s3752_s20  ;;  %v637_v59 = vsel %vm529_vm0, %v3855_v45, %v636_v48  ;;  %v607_v63 = vrot.slane %v605_v55, 1  ;;  %v610_v1 = vshll.u32 %v3870_v53, 16  ;;  %v502_v8 = vunpack.c.l.b16 %v238_v56  ;;  %v3929_v56 = vld [vmem:[%s3804_s19 + $0x78] sm:$0xff]  }
  0x1f   : > { %v571_v6 = vrot.slane %v569_v61, 1  ;;  %v576_v7 = vrot.slane %v574_v62, 1  ;;  %v504_v13 = vunpack.c.l.b16 %v240_v3  ;;  %v591_v18 = vshrl.u32 %v3863_v50, 16  ;;  %v242_v3 = vld [vmem:[%s3804_s19 + $0x74] sm:$0x1] }
  0x20   : > { %v3895_v9 = vor.u32 %v607_v63, %v603_v54  ;;  %v612_v10 = vrot.slane %v610_v1, 1  ;;  %v3897_v12 = vpack.c.b16 %v502_v8, %v502_v8  ;;  %v593_v19 = vshll.u32 %v3863_v50, 16  ;;  %v3935_v63 = vld [vmem:[%s3804_s19 + $0x6c] sm:$0xff]  }
  0x21   : > { %v572_v11 = vor.u32 %v571_v6, %v567_v60  ;;  %v3913_v29 = vpack.c.b16 %v504_v13, %v504_v13  ;;  %v615_v32 = vshrl.u32 %v3876_v57, 16  ;;  %v617_v33 = vshll.u32 %v3876_v57, 16  ;;  %v3938_v1 = vld [vmem:[%s3804_s19 + $0x6c] sm:$0xf0] }
  0x22   : > { %v613_v17 = vsel %vm529_vm0, %v3895_v9, %v612_v10  ;;  %v598_v27 = vshll.u32 %v3897_v12, 16  ;;  %v595_v30 = vrot.slane %v593_v19, 1  ;;  %v498_v35 = vunpack.c.l.b16 %v234_v16 }
  0x23   : > { %v577_v23 = vsel %vm529_vm0, %v572_v11, %v576_v7  ;;  %v622_v38 = vshll.u32 %v3913_v29, 16  ;;  %v619_v40 = vrot.slane %v617_v33, 1  ;;  %v543_v46 = vshrl.u32 %v3890_v4, 16 }
  0x24   : > { %738 = vrot.lane.b32.xlu2 %v637_v59, %s3752_s20  ;;  %v600_v37 = vrot.slane %v598_v27, 1  ;;  %v596_v39 = vor.u32 %v595_v30, %v591_v18  ;;  %v3921_v41 = vpack.c.b16 %v498_v35, %v498_v35  ;;  %v545_v47 = vshll.u32 %v3890_v4, 16  ;;  %v247_v18 = vld [vmem:[%s3804_s19 + $0xb0] sm:$0x1]  ;;  %v3952_v27 = vld [vmem:[%s3804_s19 + $0xa8] sm:$0xff]  }
  0x25   : > { %728 = vrot.lane.b32.xlu1 %v577_v23, %s3752_s20  ;;  %v624_v44 = vrot.slane %v622_v38, 1  ;;  %v508_v48 = vunpack.c.l.b16 %v244_v36  ;;  %v620_v54 = vor.u32 %v619_v40, %v615_v32  ;;  %v507_v61 = vunpack.c.l.b16 %v243_v43  ;;  %v3963_v40 = vld [vmem:[%s3804_s19 + $0x9c] sm:$0xf0] }
  0x26   : > { %734 = vrot.lane.b32.xlu0 %v613_v17, %s3752_s20  ;;  %v601_v52 = vsel %vm529_vm0, %v596_v39, %v600_v37  ;;  %v550_v55 = vshll.u32 %v3921_v41, 16  ;;  %v547_v59 = vrot.slane %v545_v47, 1  ;;  %v651_v62 = vshrl.u32 %v3929_v56, 16  ;;  %v3960_v39 = vld [vmem:[%s3804_s19 + $0x9c] sm:$0xff]  }
  0x27   : > { %v3931_v60 = vpack.c.b16 %v508_v48, %v508_v48  ;;  %v625_v6 = vsel %vm529_vm0, %v620_v54, %v624_v44  ;;  %v663_v8 = vshrl.u32 %v3905_v21, 16  ;;  %v665_v10 = vshll.u32 %v3905_v21, 16  ;;  %v246_v48 = vld [vmem:[%s3804_s19 + $0xa4] sm:$0x1] }
  0x28   : > { %v552_v7 = vrot.slane %v550_v55, 1  ;;  %v548_v11 = vor.u32 %v547_v59, %v543_v46  ;;  %v3946_v16 = vpack.c.b16 %v507_v61, %v507_v61  ;;  %v653_v17 = vshll.u32 %v3929_v56, 16  ;;  %v245_v61 = vld [vmem:[%s3804_s19 + $0x98] sm:$0x1] }
  0x29   : > { %v670_v13 = vshll.u32 %v3931_v60, 16  ;;  %v667_v19 = vrot.slane %v665_v10, 1  ;;  %v506_v23 = vunpack.c.l.b16 %v242_v3  ;;  %v511_v38 = vunpack.c.l.b16 %v247_v18 }
  0x2a   : > { %v553_v30 = vsel %vm529_vm0, %v548_v11, %v552_v7  ;;  %v655_v33 = vrot.slane %v653_v17, 1  ;;  %v658_v35 = vshll.u32 %v3946_v16, 16  ;;  %v699_v46 = vshrl.u32 %v3952_v27, 16  ;;  %v3388_v7 = vld [vmem:[%s3804_s19 + $0x90] sm:$0xff]  }
  0x2b   : > { %v672_v32 = vrot.slane %v670_v13, 1  ;;  %v668_v36 = vor.u32 %v667_v19, %v663_v8  ;;  %v3957_v37 = vpack.c.b16 %v506_v23, %v506_v23  ;;  %v701_v47 = vshll.u32 %v3952_v27, 16  ;;  %v3657_v13 = vld [vmem:[%s3804_s19 + $0xc] sm:$0xe] }
  0x2c   : > { %732 = vrot.lane.b32.xlu2 %v601_v52, %s3752_s20  ;;  %v3965_v43 = vor.u32 %v655_v33, %v651_v62  ;;  %v660_v44 = vrot.slane %v658_v35, 1  ;;  %v639_v54 = vshrl.u32 %v3935_v63, 16  ;;  %v641_v55 = vshll.u32 %v3935_v63, 16 }
  0x2d   : > { %736 = vrot.lane.b32.xlu1 %v625_v6, %s3752_s20  ;;  %v673_v52 = vsel %vm529_vm0, %v668_v36, %v672_v32  ;;  %v646_v59 = vshll.u32 %v3957_v37, 16  ;;  %v3977_v3 = vpack.c.b16 %v511_v38, %v511_v38  ;;  %v703_v6 = vrot.slane %v701_v47, 1 }
  0x2e   : > { %724 = vrot.lane.b32.xlu0 %v553_v30, %s3752_s20  ;;  %v661_v62 = vsel %vm529_vm0, %v3965_v43, %v660_v44  ;;  %v643_v8 = vrot.slane %v641_v55, 1  ;;  %v510_v11 = vunpack.c.l.b16 %v246_v48  ;;  %v509_v19 = vunpack.c.l.b16 %v245_v61  ;;  %v3995_v48 = vld [vmem:[%s3804_s19 + $0xb4] sm:$0xff]   ;;  %v3407_v61 = vld [vmem:[%s3804_s19] sm:$0xe] }
  0x2f   : > { %v648_v10 = vrot.slane %v646_v59, 1  ;;  %v3982_v17 = vor.u32 %v703_v6, %v699_v46  ;;  %v706_v18 = vshll.u32 %v3977_v3, 16  ;;  %v677_v32 = vshll.u32 %v3388_v7, 16  ;;  %v3406_v59 = vld [vmem:[%s3804_s19] sm:$0xf0] }
  0x30   : > { %v644_v23 = vor.u32 %v643_v8, %v639_v54  ;;  %v3986_v30 = vpack.c.b16 %v510_v11, %v510_v11  ;;  %v3988_v35 = vpack.c.b16 %v509_v19, %v509_v19  ;;  %v675_v36 = vshrl.u32 %v3388_v7, 16 }
  0x31   : > { %v708_v33 = vrot.slane %v706_v18, 1  ;;  %v687_v44 = vshrl.u32 %v3960_v39, 16  ;;  %v689_v46 = vshll.u32 %v3960_v39, 16  ;;  %v679_v54 = vrot.slane %v677_v32, 1 }
  0x32   : > { %v649_v38 = vsel %vm529_vm0, %v644_v23, %v648_v10  ;;  %v694_v47 = vshll.u32 %v3986_v30, 16  ;;  %v682_v55 = vshll.u32 %v3988_v35, 16  ;;  %v3658_v8 = vor.u32 %v3657_v13, %v3893_v5  ;;  %v248_v10 = vld [vmem:[%s3804_s19 + $0xbc] sm:$0x1] }
  0x33   : > { %v691_v6 = vrot.slane %v689_v46, 1  ;;  %v680_v11 = vor.u32 %v679_v54, %v675_v36  ;;  %v3408_v23 = vor.u32 %v3407_v61, %v3406_v59  ;;  %v807_v32 = vrot.slane %v3921_v41, 1  ;;  %v3412_v36 = vld [vmem:[%s3804_s19 + $0x30] sm:$0xf0] }
  0x34   : > { %744 = vrot.lane.b32.xlu2 %v673_v52, %s3752_s20  ;;  %v3998_v52 = vld [vmem:[%s3804_s19 + $0xb4] sm:$0xf0]  ;;  %v696_v7 = vrot.slane %v694_v47, 1  ;;  %v684_v18 = vrot.slane %v682_v55, 1  ;;  %v806_v46 = vrot.slane %v3658_v8, 1  ;;  %v804_v5 = vrot.slane %v3838_v28, 1 }
  0x35   : > { %742 = vrot.lane.b32.xlu1 %v661_v62, %s3752_s20  ;;  %v709_v62 = vsel %vm529_vm0, %v3982_v17, %v708_v33  ;;  %v692_v19 = vor.u32 %v691_v6, %v687_v44  ;;  %v3413_v44 = vld [vmem:[%s3804_s19 + $0x30] sm:$0xe]  ;;  %v803_v41 = vrot.slane %v3408_v23, 1  ;;  %v711_v47 = vshrl.u32 %v3995_v48, 16  ;;  %v3410_v6 = vld [vmem:[%s3804_s19 + $0x18] sm:$0xe] }
  0x36   : > { %740 = vrot.lane.b32.xlu0 %v649_v38, %s3752_s20  ;;  %v512_v38 = vunpack.c.l.b16 %v248_v10  ;;  %v685_v33 = vsel %vm529_vm0, %v680_v11, %v684_v18  ;;  %v713_v54 = vshll.u32 %v3995_v48, 16  ;;  %v3414_v61 = vor.u32 %v3413_v44, %v3412_v36 }
  0x37   : > { %v697_v45 = vsel %vm529_vm0, %v692_v19, %v696_v7  ;;  %v3663_v7 = vld [vmem:[%s3804_s19 + $0x54] sm:$0xe]  ;;  %v805_v8 = vsel %vm802_vm1, %v803_v41, %v804_v5  ;;  %v3661_v11 = vor.u32 %v3660_v26, %v3833_v25  ;;  %v816_v18 = vrot.slane %v3823_v15, 1  ;;  %v3415_v26 = vld [vmem:[%s3804_s19 + $0x48] sm:$0xf0] }
  0x38   : > { %v4015_v13 = vpack.c.b16 %v512_v38, %v512_v38  ;;  %v715_v59 = vrot.slane %v713_v54, 1  ;;  %v815_v23 = vrot.slane %v3414_v61, 1  ;;  %v3666_v38 = vld [vmem:[%s3804_s19 + $0x3c] sm:$0xe]  ;;  %v810_v25 = vrot.slane %v3827_v20, 1 }
  0x39   : > { %v3416_v5 = vld [vmem:[%s3804_s19 + $0x48] sm:$0xe]  ;;  %v3664_v44 = vor.u32 %v3663_v7, %v3879_v58  ;;  %v3422_v58 = vld [vmem:[%s3804_s19 + $0x78] sm:$0xe]  ;;  %v819_v7 = vrot.slane %v3897_v12, 1 }
  0x3a   : > { %v718_v55 = vshll.u32 %v4015_v13, 16  ;;  %v716_v10 = vor.u32 %v715_v59, %v711_v47  ;;  %v817_v15 = vsel %vm802_vm1, %v815_v23, %v816_v18  ;;  %v3417_v47 = vor.u32 %v3416_v5, %v3415_v26  ;;  %v3421_v59 = vld [vmem:[%s3804_s19 + $0x78] sm:$0xf0]  ;;  %v3675_v12 = vld [vmem:[%s3804_s19 + $0x84] sm:$0xe] }
  0x3b   : > { %v824_v20 = vrot.slane %v3664_v44, 1 }
  0x3c   : > { %750 = vrot.lane.b32.xlu2 %v709_v62, %s3752_s20  ;;  %v3409_v62 = vld [vmem:[%s3804_s19 + $0x18] sm:$0xf0]  ;;  %v720_v28 = vrot.slane %v718_v55, 1  ;;  %v825_v55 = vrot.slane %v3913_v29, 1  ;;  %v821_v61 = vrot.slane %v3417_v47, 1  ;;  %v3676_v47 = vor.u32 %v3675_v12, %v3908_v22 }
  0x3d   : > { %748 = vrot.lane.b32.xlu1 %v697_v45, %s3752_s20  ;;  %v808_v45 = vsel %vm802_vm1, %v806_v46, %v807_v32  ;;  %v3411_v32 = vor.u32 %v3410_v6, %v3409_v62  ;;  %v813_v46 = vrot.slane %v3860_v49, 1  ;;  %v3669_v49 = vld [vmem:[%s3804_s19 + $0x6c] sm:$0xe]  ;;  %v822_v62 = vrot.slane %v3870_v53, 1  ;;  %v3419_v29 = vld [vmem:[%s3804_s19 + $0x60] sm:$0xe] }
  0x3e   : > { %746 = vrot.lane.b32.xlu0 %v685_v33, %s3752_s20  ;;  %v721_v19 = vsel %vm529_vm0, %v716_v10, %v720_v28  ;;  %v812_v33 = vrot.slane %v3661_v11, 1  ;;  %v826_v28 = vsel %vm802_vm1, %v824_v20, %v825_v55  ;;  %v3418_v10 = vld [vmem:[%s3804_s19 + $0x60] sm:$0xf0]  ;;  %v3670_v18 = vor.u32 %v3669_v49, %v3938_v1  ;;  %v3424_v1 = vld [vmem:[%s3804_s19 + $0x90] sm:$0xf0] }
  0x3f   : > { %v809_v36 = vrot.slane %v3411_v32, 1  ;;  %v823_v11 = vsel %vm802_vm1, %v821_v61, %v822_v62  ;;  %v834_v53 = vrot.slane %v3946_v16, 1  ;;  %v3420_v32 = vor.u32 %v3419_v29, %v3418_v10  ;;  %v3428_v22 = vld [vmem:[%s3804_s19 + $0xa8] sm:$0xe]  ;;  %v4114_v29 = vld [vmem:[%s3804_s19 + $0x54] sm:$0xf0] }
  0x40   : > { %v814_v41 = vsel %vm802_vm1, %v812_v33, %v813_v46  ;;  %v831_v33 = vrot.slane %v3957_v37, 1  ;;  %v828_v46 = vrot.slane %v3845_v34, 1  ;;  %v3678_v37 = vld [vmem:[%s3804_s19 + $0xb4] sm:$0xe]  ;;  %v840_v49 = vrot.slane %v3988_v35, 1 }
  0x41   : > { %v811_v54 = vsel %vm802_vm1, %v809_v36, %v810_v25  ;;  %v3425_v25 = vld [vmem:[%s3804_s19 + $0x90] sm:$0xe]  ;;  %v827_v16 = vrot.slane %v3420_v32, 1  ;;  %v836_v20 = vrot.slane %v3676_v47, 1  ;;  %v837_v55 = vrot.slane %v3931_v60, 1 }
  0x42   : > { %v3426_v36 = vor.u32 %v3425_v25, %v3424_v1  ;;  %v3679_v61 = vor.u32 %v3678_v37, %v3998_v52  ;;  %v846_v52 = vrot.slane %v3977_v3, 1  ;;  %v4103_v10 = vld [vmem:[%s3804_s19 + $0x24] sm:$0xf0]  ;;  %v4111_v3 = vld [vmem:[%s3804_s19 + $0x54] sm:$0xff]   ;;  %v3680_v32 = vld [vmem:[%s3804_s19 + $0x6c] sm:$0xf0] }
  0x43   : > { %v829_v44 = vsel %vm802_vm1, %v827_v16, %v828_v46  ;;  %v838_v35 = vsel %vm802_vm1, %v836_v20, %v837_v55  ;;  %v3142_v12 = vld [vmem:[%s3804_s19 + $0xa4] sm:$0x1]  ;;  %v3684_v20 = vld [vmem:[%s3804_s19 + $0x9c] sm:$0xe] }
  0x44   : > { %853 = vrot.lane.b32.xlu2 %v808_v45, %s3753_s21  ;;  %v3667_v45 = vor.u32 %v3666_v38, %v3866_v51  ;;  %v3672_v51 = vld [vmem:[%s3804_s19 + $0x9c] sm:$0xe]  ;;  %v830_v38 = vrot.slane %v3670_v18, 1  ;;  %v848_v60 = vrot.slane %v3679_v61, 1  ;;  %v1023_v46 = vunpack.c.l.b16 %v3142_v12 }
  0x45   : > { %851 = vrot.lane.b32.xlu1 %v805_v8, %s3753_s21  ;;  %v3423_v8 = vor.u32 %v3422_v58, %v3421_v59  ;;  %v3673_v5 = vor.u32 %v3672_v51, %v3963_v40  ;;  %v839_v40 = vrot.slane %v3426_v36, 1  ;;  %v4086_v59 = vld [vmem:[%s3804_s19 + $0xc] sm:$0xf0]  ;;  %v3122_v51 = vld [vmem:[%s3804_s19 + $0x9c] sm:$0xff]  }
  0x46   : > { %752 = vrot.lane.b32.xlu0 %v721_v19, %s3752_s20  ;;  %v818_v6 = vrot.slane %v3667_v45, 1  ;;  %v4083_v45 = vld [vmem:[%s3804_s19 + $0xc] sm:$0xff]   ;;  %v4121_v18 = vld [vmem:[%s3804_s19 + $0x3c] sm:$0xff]   ;;  %v1039_v16 = vpack.c.b16 %v1023_v46, %v1023_v46  ;;  %v1188_v36 = vshrl.u32 %v3122_v51, 16  ;;  %v3130_v46 = vld [vmem:[%s3804_s19 + $0x14] sm:$0x1] }
  0x47   : > { %v833_v23 = vrot.slane %v3423_v8, 1  ;;  %v842_v34 = vrot.slane %v3673_v5, 1  ;;  %v841_v58 = vsel %vm802_vm1, %v839_v40, %v840_v49  ;;  %v4100_v8 = vld [vmem:[%s3804_s19 + $0x24] sm:$0xff]  }
  0x48   : > { %v820_v19 = vsel %vm802_vm1, %v818_v6, %v819_v7 }
  0x49   : > { %v835_v26 = vsel %vm802_vm1, %v833_v23, %v834_v53  ;;  %v4124_v53 = vld [vmem:[%s3804_s19 + $0x3c] sm:$0xf0]  ;;  %v3114_v23 = vld [vmem:[%s3804_s19 + $0x6c] sm:$0xff]  }
  0x4a   : > { %v1140_v47 = vshrl.u32 %v3114_v23, 16 }
  0x4c   : > { %859 = vrot.lane.b32.xlu2 %v817_v15, %s3753_s21  ;;  %v832_v15 = vsel %vm802_vm1, %v830_v38, %v831_v33  ;;  %v3138_v38 = vld [vmem:[%s3804_s19 + $0x74] sm:$0x1]  ;;  %v3681_v33 = vld [vmem:[%s3804_s19 + $0x6c] sm:$0xe] }
  0x4d   : > { %857 = vrot.lane.b32.xlu1 %v814_v41, %s3753_s21  ;;  %v843_v41 = vrot.slane %v3986_v30, 1  ;;  %v3427_v30 = vld [vmem:[%s3804_s19 + $0xa8] sm:$0xf0]  ;;  %v1019_v1 = vunpack.c.l.b16 %v3138_v38 }
  0x4e   : > { %855 = vrot.lane.b32.xlu0 %v811_v54, %s3753_s21  ;;  %v3429_v62 = vor.u32 %v3428_v22, %v3427_v30  ;;  %v3206_v22 = vld [vmem:[%s3804_s19 + $0xb0] sm:$0x1] }
  0x4f   : > { %v844_v54 = vsel %vm802_vm1, %v842_v34, %v843_v41  ;;  %v1035_v5 = vpack.c.b16 %v1019_v1, %v1019_v1 }
  0x50   : > { %v845_v6 = vrot.slane %v3429_v62, 1  ;;  %v3202_v62 = vld [vmem:[%s3804_s19 + $0x80] sm:$0x1] }
  0x51   : > { %v1340_v34 = vrot.slane %v1035_v5, 1  ;;  %v1147_v49 = vshll.u32 %v1035_v5, 16 }
  0x54   : > { %865 = vrot.lane.b32.xlu2 %v826_v28, %s3753_s21  ;;  %v849_v28 = vrot.slane %v4015_v13, 1  ;;  %v847_v13 = vsel %vm802_vm1, %v845_v6, %v846_v52  ;;  %v1531_v6 = vunpack.c.l.b16 %v3202_v62 }
  0x55   : > { %863 = vrot.lane.b32.xlu1 %v823_v11, %s3753_s21  ;;  %v3683_v11 = vld [vmem:[%s3804_s19 + $0x9c] sm:$0xf0] }
  0x56   : > { %861 = vrot.lane.b32.xlu0 %v820_v19, %s3753_s21  ;;  %v850_v7 = vsel %vm802_vm1, %v848_v60, %v849_v28  ;;  %v1535_v28 = vunpack.c.l.b16 %v3206_v22 }
  0x58   : > { %v4166_v12 = vpack.c.b16 %v1535_v28, %v1535_v28  ;;  %v3473_v28 = vld [vmem:[%s3804_s19 + $0xa8] sm:$0xe] }
  0x5a   : > { %v1707_v5 = vshll.u32 %v4166_v12, 16 }
  0x5c   : > { %871 = vrot.lane.b32.xlu2 %v835_v26, %s3753_s21  ;;  %v1190_v26 = vshll.u32 %v3122_v51, 16 }
  0x5d   : > { %869 = vrot.lane.b32.xlu1 %v832_v15, %s3753_s21  ;;  %v3682_v15 = vor.u32 %v3681_v33, %v3680_v32  ;;  %v1547_v33 = vpack.c.b16 %v1531_v6, %v1531_v6 }
  0x5e   : > { %867 = vrot.lane.b32.xlu0 %v829_v44, %s3753_s21  ;;  %v1192_v37 = vrot.slane %v1190_v26, 1  ;;  %v1195_v44 = vshll.u32 %v1039_v16, 16 }
  0x5f   : > { %v1339_v41 = vrot.slane %v3682_v15, 1  ;;  %v1011_v15 = vunpack.c.l.b16 %v3130_v46 }
  0x60   : > { %v1193_v55 = vor.u32 %v1192_v37, %v1188_v36  ;;  %v1197_v30 = vrot.slane %v1195_v44, 1  ;;  %v1094_v36 = vshll.u32 %v4121_v18, 16  ;;  %v1659_v37 = vshll.u32 %v1547_v33, 16 }
  0x62   : > { %v1198_v60 = vsel %vm529_vm0, %v1193_v55, %v1197_v30  ;;  %v4186_v55 = vpack.c.b16 %v1011_v15, %v1011_v15  ;;  %v1661_v22 = vrot.slane %v1659_v37, 1 }
  0x64   : > { %877 = vrot.lane.b32.xlu2 %v844_v54, %s3753_s21 }
  0x65   : > { %875 = vrot.lane.b32.xlu1 %v841_v58, %s3753_s21  ;;  %v1341_v58 = vsel %vm802_vm1, %v1339_v41, %v1340_v34  ;;  %v1852_v41 = vrot.slane %v1547_v33, 1 }
  0x66   : > { %873 = vrot.lane.b32.xlu0 %v838_v35, %s3753_s21  ;;  %v1149_v35 = vrot.slane %v1147_v49, 1 }
  0x6c   : > { %963 = vrot.lane.b32.xlu2 %v4083_v45, %s3754_s22 }
  0x6d   : > { %881 = vrot.lane.b32.xlu1 %v850_v7, %s3753_s21 }
  0x6e   : > { %879 = vrot.lane.b32.xlu0 %v847_v13, %s3753_s21  ;;  %v3466_v13 = vld [vmem:[%s3804_s19 + $0x78] sm:$0xf0] }
  0x74   : > { %969 = vrot.lane.b32.xlu2 %v3807_v0, %s3754_s22 }
  0x75   : > { %967 = vrot.lane.b32.xlu1 %v4100_v8, %s3754_s22 }
  0x76   : > { %v4128_v19 = vpop.permute.xlu2 %730  ;;  %965 = vrot.lane.b32.xlu0 %v3811_v2, %s3754_s22  ;;  %v1142_v2 = vshll.u32 %v3114_v23, 16 }
  0x78   : > { %v1144_v40 = vrot.slane %v1142_v2, 1 }
  0x7a   : > { %v1145_v61 = vor.u32 %v1144_v40, %v1140_v47  ;;  %v1046_v40 = vshll.u32 %v4083_v45, 16 }
  0x7c   : > { %975 = vrot.lane.b32.xlu2 %v4111_v3, %s3754_s22  ;;  %v1150_v52 = vsel %vm529_vm0, %v1145_v61, %v1149_v35  ;;  %v1096_v35 = vrot.slane %v1094_v36, 1  ;;  %v3194_v36 = vld [vmem:[%s3804_s19 + $0x20] sm:$0x1] }
  0x7d   : > { %973 = vrot.lane.b32.xlu1 %v3851_v42, %s3754_s22 }
  0x7e   : > { %v4141_v25 = vpop.permute.xlu2 %738  ;;  %971 = vrot.lane.b32.xlu0 %v4121_v18, %s3754_s22 }
  0x84   : > { %987 = vrot.lane.b32.xlu2 %v3122_v51, %s3754_s22  ;;  %v3467_v51 = vld [vmem:[%s3804_s19 + $0x78] sm:$0xe] }
  0x85   : > { %979 = vrot.lane.b32.xlu1 %v3114_v23, %s3754_s22  ;;  %v3134_v23 = vld [vmem:[%s3804_s19 + $0x44] sm:$0x1]  ;;  %v3468_v26 = vor.u32 %v3467_v51, %v3466_v13  ;;  %v1051_v13 = vshll.u32 %v4186_v55, 16  ;;  %v3687_v51 = vld [vmem:[%s3804_s19 + $0x3c] sm:$0xe] }
  0x86   : > { %v4147_v54 = vpop.permute.xlu2 %732  ;;  %977 = vrot.lane.b32.xlu0 %v3821_v14, %s3754_s22  ;;  %v3685_v14 = vor.u32 %v3684_v20, %v3683_v11  ;;  %v1352_v11 = vrot.slane %v1039_v16, 1  ;;  %v1015_v2 = vunpack.c.l.b16 %v3134_v23  ;;  %v1709_v20 = vrot.slane %v1707_v5, 1 }
  0x87   : > { %v1851_v34 = vrot.slane %v3468_v26, 1  ;;  %v1662_v23 = vsel %vm529_vm0, %v3965_v43, %v1661_v22  ;;  %v1053_v5 = vrot.slane %v1051_v13, 1  ;;  %v3398_v22 = vld [vmem:[%s3804_s19 + $0x18] sm:$0xff]  }
  0x88   : > { %v1351_v1 = vrot.slane %v3685_v14, 1  ;;  %v4177_v47 = vpack.c.b16 %v1015_v2, %v1015_v2  ;;  %v1710_v6 = vsel %vm529_vm0, %v3982_v17, %v1709_v20  ;;  %v1048_v14 = vrot.slane %v1046_v40, 1 }
  0x89   : > { %v1853_v61 = vsel %vm802_vm1, %v1851_v34, %v1852_v41  ;;  %v1864_v34 = vrot.slane %v4166_v12, 1 }
  0x8a   : > { %v1353_v44 = vsel %vm802_vm1, %v1351_v1, %v1352_v11  ;;  %v1099_v62 = vshll.u32 %v4177_v47, 16  ;;  %v3690_v11 = vld [vmem:[%s3804_s19 + $0xc] sm:$0xe]  ;;  %v1328_v13 = vrot.slane %v4177_v47, 1 }
  0x8c   : > { %1379 = vrot.lane.b32.xlu2 %v1341_v58, %s3755_s23  ;;  %v1092_v58 = vshrl.u32 %v4121_v18, 16  ;;  %v1101_v46 = vrot.slane %v1099_v62, 1 }
  0x8d   : > { %1259 = vrot.lane.b32.xlu1 %v1198_v60, %s3756_s24  ;;  %v3472_v60 = vld [vmem:[%s3804_s19 + $0xa8] sm:$0xf0] }
  0x8e   : > { %v4159_v7 = vpop.permute.xlu2 %744  ;;  %1251 = vrot.lane.b32.xlu0 %v1150_v52, %s3756_s24  ;;  %v1044_v52 = vshrl.u32 %v4083_v45, 16  ;;  %v3474_v18 = vor.u32 %v3473_v28, %v3472_v60  ;;  %v1097_v33 = vor.u32 %v1096_v35, %v1092_v58  ;;  %v3198_v45 = vld [vmem:[%s3804_s19 + $0x50] sm:$0x1]  ;;  %v3688_v58 = vor.u32 %v3687_v51, %v4124_v53 }
  0x8f   : > { %v4164_v32 = vpop.permute.xlu1 %726  ;;  %v1527_v41 = vunpack.c.l.b16 %v3198_v45  ;;  %v3691_v60 = vor.u32 %v3690_v11, %v4086_v59  ;;  %v1558_v53 = vshll.u32 %v3398_v22, 16  ;;  %v1316_v51 = vrot.slane %v4186_v55, 1 }
  0x90   : > { %v4169_v38 = vpop.permute.xlu0 %722  ;;  %v1049_v2 = vor.u32 %v1048_v14, %v1044_v52  ;;  %v1863_v15 = vrot.slane %v3474_v18, 1  ;;  %v1327_v14 = vrot.slane %v3688_v58, 1 }
  0x91   : > { %v4222_v12 = vpack.c.b16 %v1527_v41, %v1527_v41  ;;  %v1315_v59 = vrot.slane %v3691_v60, 1  ;;  %v3139_v41 = vld [vmem:[%s3804_s19 + $0x80] sm:$0x1] }
  0x92   : > { %v1054_v20 = vsel %vm529_vm0, %v1049_v2, %v1053_v5  ;;  %v1865_v62 = vsel %vm802_vm1, %v1863_v15, %v1864_v34  ;;  %v3143_v2 = vld [vmem:[%s3804_s19 + $0xb0] sm:$0x1]  ;;  %v3461_v34 = vld [vmem:[%s3804_s19 + $0x48] sm:$0xe] }
  0x93   : > { %v1317_v47 = vsel %vm802_vm1, %v1315_v59, %v1316_v51  ;;  %v1840_v59 = vrot.slane %v4222_v12, 1 }
  0x94   : > { %1499 = vrot.lane.b32.xlu2 %v3952_v27, %s3757_s25 }
  0x95   : > { %1491 = vrot.lane.b32.xlu1 %v3929_v56, %s3757_s25 }
  0x96   : > { %v4181_v16 = vpop.permute.xlu2 %750  ;;  %1387 = vrot.lane.b32.xlu0 %v1353_v44, %s3755_s23  ;;  %v1102_v44 = vsel %vm529_vm0, %v1097_v33, %v1101_v46  ;;  %v1560_v33 = vrot.slane %v1558_v53, 1  ;;  %v1329_v46 = vsel %vm802_vm1, %v1327_v14, %v1328_v13 }
  0x97   : > { %v4184_v49 = vpop.permute.xlu1 %728 }
  0x98   : > { %v4189_v30 = vpop.permute.xlu0 %734 }
  0x9c   : > { %1891 = vrot.lane.b32.xlu2 %v1853_v61, %s3758_s26  ;;  %v1523_v61 = vunpack.c.l.b16 %v3194_v36 }
  0x9d   : > { %1771 = vrot.lane.b32.xlu1 %v1710_v6, %s3759_s27 }
  0x9e   : > { %v854_v1 = vpop.permute.xlu2 %853  ;;  %1763 = vrot.lane.b32.xlu0 %v1662_v23, %s3759_s27  ;;  %v1539_v18 = vpack.c.b16 %v1523_v61, %v1523_v61  ;;  %v1556_v23 = vshrl.u32 %v3398_v22, 16 }
  0x9f   : > { %v737_v26 = vpop.permute.xlu1 %736 }
  0xa0   : > { %v725_v37 = vpop.permute.xlu0 %724  ;;  %v1923_v55 = vsel %vm1907_vm2, %v3876_v57, %v737_v26  ;;  %v1561_v5 = vor.u32 %v1560_v33, %v1556_v23  ;;  %v1024_v57 = vunpack.c.l.b16 %v3143_v2 }
  0xa1   : > { %v1911_v40 = vsel %vm1907_vm2, %v3890_v4, %v725_v37  ;;  %v1917_v4 = vsel %vm1907_vm2, %v3807_v0, %v4128_v19  ;;  %v1611_v0 = vshll.u32 %v4222_v12, 16 }
  0xa2   : > { %v4217_v35 = vsel %vm1940_vm3, %v1911_v40, %v854_v1  ;;  %v1563_v1 = vshll.u32 %v1539_v18, 16 }
  0xa3   : > { %v1613_v11 = vrot.slane %v1611_v0, 1  ;;  %v3649_v0 = vld [vmem:[%s3804_s19] sm:$0xff]  }
  0xa4   : > { %1243 = vrot.lane.b32.xlu2 %v1102_v44, %s3756_s24  ;;  %v1565_v36 = vrot.slane %v1563_v1, 1  ;;  %v3460_v44 = vld [vmem:[%s3804_s19 + $0x48] sm:$0xf0]  ;;  %v1909_v23 = vsel %vm1907_vm2, %v3649_v0, %v4169_v38  ;;  %v1828_v1 = vrot.slane %v1539_v18, 1  ;;  %v4293_v18 = vld [vmem:[%s3804_s19 + $0x84] sm:$0xf0] }
  0xa5   : > { %1235 = vrot.lane.b32.xlu1 %v1054_v20, %s3756_s24  ;;  %v1614_v40 = vsel %vm529_vm0, %v3895_v9, %v1613_v11  ;;  %v3454_v20 = vld [vmem:[%s3804_s19 + $0x18] sm:$0xf0]  ;;  %v3462_v61 = vor.u32 %v3461_v34, %v3460_v44  ;;  %v4280_v11 = vld [vmem:[%s3804_s19 + $0xb4] sm:$0xff]  }
  0xa6   : > { %v860_v28 = vpop.permute.xlu2 %859  ;;  %1899 = vrot.lane.b32.xlu0 %v1865_v62, %s3758_s26  ;;  %v1566_v58 = vsel %vm529_vm0, %v1561_v5, %v1565_v36  ;;  %v1020_v62 = vunpack.c.l.b16 %v3139_v41  ;;  %v3207_v34 = vld [vmem:[%s3804_s19 + $0xbc] sm:$0x1] }
  0xa7   : > { %v743_v6 = vpop.permute.xlu1 %742  ;;  %v4229_v52 = vsel %vm1940_vm3, %v1917_v4, %v860_v28  ;;  %v4259_v4 = vpack.c.b16 %v1024_v57, %v1024_v57  ;;  %v1839_v13 = vrot.slane %v3462_v61, 1  ;;  %v3449_v57 = vld [vmem:[%s3804_s19 + $0xa8] sm:$0xe]  ;;  %v3442_v61 = vld [vmem:[%s3804_s19 + $0x78] sm:$0xf0] }
  0xa8   : > { %v4235_v19 = vpop.permute.xlu0 %740  ;;  %v1929_v28 = vsel %vm1907_vm2, %v3929_v56, %v743_v6  ;;  %v4268_v51 = vpack.c.b16 %v1020_v62, %v1020_v62  ;;  %v3443_v62 = vld [vmem:[%s3804_s19 + $0x78] sm:$0xe] }
  0xa9   : > { %v1841_v38 = vsel %vm802_vm1, %v1839_v13, %v1840_v59 }
  0xac   : > { %1475 = vrot.lane.b32.xlu2 %v3398_v22, %s3757_s25  ;;  %v3455_v22 = vld [vmem:[%s3804_s19 + $0x18] sm:$0xe] }
  0xad   : > { %1371 = vrot.lane.b32.xlu1 %v1329_v46, %s3755_s23  ;;  %v3456_v60 = vor.u32 %v3455_v22, %v3454_v20  ;;  %v1915_v20 = vsel %vm1907_vm2, %v3830_v24, %v4184_v49 }
  0xae   : > { %v866_v45 = vpop.permute.xlu2 %865  ;;  %1363 = vrot.lane.b32.xlu0 %v1317_v47, %s3755_s23  ;;  %v1207_v47 = vshll.u32 %v4259_v4, 16 }
  0xaf   : > { %v4245_v15 = vsel %vm1940_vm3, %v1923_v55, %v866_v45  ;;  %v749_v37 = vpop.permute.xlu1 %748  ;;  %v1827_v46 = vrot.slane %v3456_v60, 1  ;;  %v4283_v55 = vld [vmem:[%s3804_s19 + $0xb4] sm:$0xf0]  ;;  %v4290_v45 = vld [vmem:[%s3804_s19 + $0x84] sm:$0xff]   ;;  %v1536_v60 = vunpack.c.l.b16 %v3207_v34  ;;  %v1712_v34 = vshrl.u32 %v4280_v11, 16 }
  0xb0   : > { %v4253_v26 = vpop.permute.xlu0 %746  ;;  %v1209_v5 = vrot.slane %v1207_v47, 1  ;;  %v1935_v36 = vsel %vm1907_vm2, %v3960_v39, %v749_v37  ;;  %v3131_v47 = vld [vmem:[%s3804_s19 + $0x20] sm:$0x1] }
  0xb1   : > { %v1829_v2 = vsel %vm802_vm1, %v1827_v46, %v1828_v1  ;;  %v1355_v1 = vrot.slane %v4259_v4, 1  ;;  %v1343_v4 = vrot.slane %v4268_v51, 1 }
  0xb2   : > { %v1210_v37 = vsel %vm529_vm0, %v3982_v17, %v1209_v5  ;;  %v3444_v17 = vor.u32 %v3443_v62, %v3442_v61  ;;  %v3693_v61 = vld [vmem:[%s3804_s19 + $0xb4] sm:$0xe] }
  0xb4   : > { %1755 = vrot.lane.b32.xlu2 %v1614_v40, %s3759_s27  ;;  %v3448_v40 = vld [vmem:[%s3804_s19 + $0xa8] sm:$0xf0] }
  0xb5   : > { %1747 = vrot.lane.b32.xlu1 %v1566_v58, %s3759_s27  ;;  %v3203_v58 = vld [vmem:[%s3804_s19 + $0x8c] sm:$0x1]  ;;  %v3450_v59 = vor.u32 %v3449_v57, %v3448_v40  ;;  %v1012_v57 = vunpack.c.l.b16 %v3131_v47  ;;  %v3694_v47 = vor.u32 %v3693_v61, %v4283_v55 }
  0xb6   : > { %v872_v53 = vpop.permute.xlu2 %871  ;;  %1483 = vrot.lane.b32.xlu0 %v3851_v42, %s3757_s25  ;;  %v1159_v42 = vshll.u32 %v4268_v51, 16  ;;  %v1532_v0 = vunpack.c.l.b16 %v3203_v58  ;;  %v1664_v51 = vshrl.u32 %v4290_v45, 16 }
  0xb7   : > { %v4265_v14 = vsel %vm1940_vm3, %v1929_v28, %v872_v53  ;;  %v852_v6 = vpop.permute.xlu1 %851  ;;  %v3650_v28 = vld [vmem:[%s3804_s19 + $0x18] sm:$0xff]   ;;  %v1354_v46 = vrot.slane %v3450_v59, 1 }
  0xb8   : > { %v1942_v33 = vsel %vm1940_vm3, %v1909_v23, %v852_v6  ;;  %v4277_v12 = vpop.permute.xlu0 %752  ;;  %v1161_v41 = vrot.slane %v1159_v42, 1  ;;  %v1913_v53 = vsel %vm1907_vm2, %v3650_v28, %v4164_v32  ;;  %v4324_v23 = vpack.c.b16 %v1536_v60, %v1536_v60  ;;  %v3696_v28 = vld [vmem:[%s3804_s19 + $0x84] sm:$0xe] }
  0xb9   : > { %v1714_v6 = vshll.u32 %v4280_v11, 16  ;;  %v4334_v42 = vpack.c.b16 %v1532_v0, %v1532_v0 }
  0xba   : > { %v1162_v49 = vsel %vm529_vm0, %v3965_v43, %v1161_v41  ;;  %v1666_v43 = vshll.u32 %v4290_v45, 16  ;;  %v1719_v40 = vshll.u32 %v4324_v23, 16  ;;  %v1867_v55 = vrot.slane %v4324_v23, 1 }
  0xbb   : > { %v1716_v41 = vrot.slane %v1714_v6, 1  ;;  %v1931_v23 = vsel %vm1907_vm2, %v3905_v21, %v4159_v7 }
  0xbc   : > { %981 = vrot.lane.b32.xlu2 %v3929_v56, %s3754_s22  ;;  %v1668_v58 = vrot.slane %v1666_v43, 1  ;;  %v3697_v43 = vor.u32 %v3696_v28, %v4293_v18  ;;  %v3698_v28 = vld [vmem:[%s3804_s19 + $0x54] sm:$0xf0] }
  0xbd   : > { %1883 = vrot.lane.b32.xlu1 %v1841_v38, %s3758_s26  ;;  %v1717_v60 = vor.u32 %v1716_v41, %v1712_v34  ;;  %v3437_v34 = vld [vmem:[%s3804_s19 + $0x48] sm:$0xe] }
  0xbe   : > { %v878_v44 = vpop.permute.xlu2 %877  ;;  %1875 = vrot.lane.b32.xlu0 %v1829_v2, %s3758_s26  ;;  %v3651_v2 = vld [vmem:[%s3804_s19 + $0x48] sm:$0xff]   ;;  %v1669_v59 = vor.u32 %v1668_v58, %v1664_v51  ;;  %v1854_v18 = vrot.slane %v3697_v43, 1 }
  0xbf   : > { %v4301_v56 = vsel %vm1940_vm3, %v1935_v36, %v878_v44  ;;  %v858_v22 = vpop.permute.xlu1 %857  ;;  %v1921_v5 = vsel %vm1907_vm2, %v3651_v2, %v4189_v30  ;;  %v1342_v44 = vrot.slane %v3444_v17, 1  ;;  %v1919_v30 = vsel %vm1907_vm2, %v3863_v50, %v4147_v54 }
  0xc0   : > { %v1948_v39 = vsel %vm1940_vm3, %v1915_v20, %v858_v22  ;;  %v856_v13 = vpop.permute.xlu0 %855  ;;  %v1721_v50 = vrot.slane %v1719_v40, 1  ;;  %v4358_v54 = vpack.c.b16 %v1012_v57, %v1012_v57  ;;  %v1866_v40 = vrot.slane %v3694_v47, 1 }
  0xc1   : > { %v4319_v24 = vsel %vm1940_vm3, %v1913_v53, %v856_v13  ;;  %v1344_v62 = vsel %vm802_vm1, %v1342_v44, %v1343_v4  ;;  %v3436_v4 = vld [vmem:[%s3804_s19 + $0x48] sm:$0xf0] }
  0xc2   : > { %v1722_v6 = vsel %vm529_vm0, %v1717_v60, %v1721_v50 }
  0xc4   : > { %1261 = vrot.lane.b32.xlu2 %v1210_v37, %s3756_s24  ;;  %v1671_v37 = vshll.u32 %v4334_v42, 16 }
  0xc5   : > { %1253 = vrot.lane.b32.xlu1 %v1162_v49, %s3756_s24 }
  0xc6   : > { %v964_v32 = vpop.permute.xlu2 %963  ;;  %989 = vrot.lane.b32.xlu0 %v3952_v27, %s3754_s22  ;;  %v1356_v27 = vsel %vm802_vm1, %v1354_v46, %v1355_v1  ;;  %v1673_v49 = vrot.slane %v1671_v37, 1  ;;  %v4378_v46 = vld [vmem:[%s3804_s19 + $0x24] sm:$0xf0]  ;;  %v3438_v37 = vor.u32 %v3437_v34, %v3436_v4 }
  0xc7   : > { %v4331_v38 = vsel %vm1973_vm4, %v1942_v33, %v964_v32  ;;  %v864_v36 = vpop.permute.xlu1 %863  ;;  %v4375_v32 = vld [vmem:[%s3804_s19 + $0x24] sm:$0xff]  }
  0xc8   : > { %v1954_v33 = vsel %vm1940_vm3, %v1921_v5, %v864_v36  ;;  %v862_v20 = vpop.permute.xlu0 %861  ;;  %v3195_v36 = vld [vmem:[%s3804_s19 + $0x2c] sm:$0x1]  ;;  %v4440_v4 = vld [vmem:[%s3804_s19 + $0x84] sm:$0xff]  }
  0xc9   : > { %v4350_v22 = vsel %vm1940_vm3, %v1919_v30, %v862_v20  ;;  %v3430_v30 = vld [vmem:[%s3804_s19 + $0x18] sm:$0xf0]  ;;  %v3431_v20 = vld [vmem:[%s3804_s19 + $0x18] sm:$0xe]  ;;  %v4443_v34 = vld [vmem:[%s3804_s19 + $0x84] sm:$0xf0] }
  0xca   : > { %v3432_v60 = vor.u32 %v3431_v20, %v3430_v30 }
  0xcc   : > { %1493 = vrot.lane.b32.xlu2 %v4290_v45, %s3757_s25  ;;  %v1927_v45 = vsel %vm1907_vm2, %v3935_v63, %v4235_v19  ;;  %v3135_v63 = vld [vmem:[%s3804_s19 + $0x50] sm:$0x1]  ;;  %v1674_v19 = vsel %vm529_vm0, %v1669_v59, %v1673_v49  ;;  %v1330_v59 = vrot.slane %v3438_v37, 1  ;;  %v3140_v37 = vld [vmem:[%s3804_s19 + $0x8c] sm:$0x1] }
  0xcd   : > { %1389 = vrot.lane.b32.xlu1 %v1356_v27, %s3755_s23  ;;  %v1016_v5 = vunpack.c.l.b16 %v3135_v63  ;;  %v1524_v27 = vunpack.c.l.b16 %v3195_v36  ;;  %v1568_v63 = vshrl.u32 %v4375_v32, 16  ;;  %v3699_v36 = vld [vmem:[%s3804_s19 + $0x54] sm:$0xe] }
  0xce   : > { %v970_v53 = vpop.permute.xlu2 %969  ;;  %1381 = vrot.lane.b32.xlu0 %v1344_v62, %s3755_s23  ;;  %v1868_v62 = vsel %vm802_vm1, %v1866_v40, %v1867_v55 }
  0xcf   : > { %v4363_v13 = vsel %vm1973_vm4, %v1948_v39, %v970_v53  ;;  %v870_v0 = vpop.permute.xlu1 %869  ;;  %v1063_v39 = vshll.u32 %v4358_v54, 16  ;;  %v1032_v58 = vpack.c.b16 %v1016_v5, %v1016_v5  ;;  %v4412_v50 = vpack.c.b16 %v1524_v27, %v1524_v27  ;;  %v3199_v5 = vld [vmem:[%s3804_s19 + $0x5c] sm:$0x1]  ;;  %v3702_v27 = vld [vmem:[%s3804_s19 + $0x24] sm:$0xe] }
  0xd0   : > { %v4370_v17 = vsel %vm1940_vm3, %v1927_v45, %v870_v0  ;;  %v4380_v1 = vpop.permute.xlu0 %867  ;;  %v1318_v45 = vrot.slane %v3432_v60, 1  ;;  %v1319_v0 = vrot.slane %v4358_v54, 1  ;;  %v1528_v20 = vunpack.c.l.b16 %v3199_v5 }
  0xd1   : > { %v1065_v2 = vrot.slane %v1063_v39, 1  ;;  %v1331_v21 = vrot.slane %v1032_v58, 1  ;;  %v1111_v7 = vshll.u32 %v1032_v58, 16  ;;  %v1575_v47 = vshll.u32 %v4412_v50, 16 }
  0xd2   : > { %v1320_v55 = vsel %vm802_vm1, %v1318_v45, %v1319_v0  ;;  %v3703_v0 = vor.u32 %v3702_v27, %v4378_v46  ;;  %v3704_v46 = vld [vmem:[%s3804_s19 + $0xb4] sm:$0xf0] }
  0xd3   : > { %v1066_v51 = vsel %vm529_vm0, %v3842_v31, %v1065_v2  ;;  %v1570_v31 = vshll.u32 %v4375_v32, 16  ;;  %v1332_v2 = vsel %vm802_vm1, %v1330_v59, %v1331_v21  ;;  %v1113_v54 = vrot.slane %v1111_v7, 1 }
  0xd4   : > { %1773 = vrot.lane.b32.xlu2 %v1722_v6, %s3759_s27  ;;  %v1939_v6 = vsel %vm1907_vm2, %v3995_v48, %v4277_v12  ;;  %v1577_v30 = vrot.slane %v1575_v47, 1  ;;  %v1021_v59 = vunpack.c.l.b16 %v3140_v37  ;;  %v1830_v5 = vrot.slane %v3703_v0, 1 }
  0xd5   : > { %1765 = vrot.lane.b32.xlu1 %v1674_v19, %s3759_s27  ;;  %v1572_v19 = vrot.slane %v1570_v31, 1  ;;  %v1544_v31 = vpack.c.b16 %v1528_v20, %v1528_v20 }
  0xd6   : > { %v976_v44 = vpop.permute.xlu2 %975  ;;  %1501 = vrot.lane.b32.xlu0 %v4280_v11, %s3757_s25  ;;  %v4477_v47 = vpack.c.b16 %v1021_v59, %v1021_v59 }
  0xd7   : > { %v4392_v41 = vsel %vm1973_vm4, %v1954_v33, %v976_v44  ;;  %v4397_v57 = vpop.permute.xlu1 %875  ;;  %v1855_v33 = vrot.slane %v4334_v42, 1  ;;  %v4416_v42 = vld [vmem:[%s3804_s19 + $0x54] sm:$0xff]   ;;  %v3652_v44 = vld [vmem:[%s3804_s19 + $0xa8] sm:$0xff]  }
  0xd8   : > { %v874_v11 = vpop.permute.xlu0 %873  ;;  %v1937_v48 = vsel %vm1907_vm2, %v3652_v44, %v4181_v16  ;;  %v2175_v16 = vld [vmem:[%s5305_s1 + $0x10] sm:$0x3]  ;;  %v1171_v20 = vshll.u32 %v4477_v47, 16 }
  0xd9   : > { %v4408_v61 = vsel %vm1940_vm3, %v1931_v23, %v874_v11  ;;  %v1856_v53 = vsel %vm802_vm1, %v1854_v18, %v1855_v33  ;;  %v1573_v18 = vor.u32 %v1572_v19, %v1568_v63  ;;  %v2189_v33 = vunpack.c.l.b16 %v2175_v16  ;;  %v3705_v16 = vld [vmem:[%s3804_s19 + $0xb4] sm:$0xe] }
  0xda   : > { %v1618_v23 = vshll.u32 %v4416_v42, 16  ;;  %v1843_v63 = vrot.slane %v1544_v31, 1  ;;  %v1623_v19 = vshll.u32 %v1544_v31, 16 }
  0xdb   : > { %v2192_v11 = vpack.c.b16 %v2189_v33, %v2189_v33  ;;  %v1578_v60 = vsel %vm529_vm0, %v1573_v18, %v1577_v30  ;;  %v1164_v18 = vshrl.u32 %v4440_v4, 16 }
  0xdc   : > { %1237 = vrot.lane.b32.xlu2 %v1066_v51, %s3756_s24  ;;  %v1114_v51 = vsel %vm529_vm0, %v3895_v9, %v1113_v54 }
  0xdd   : > { %1901 = vrot.lane.b32.xlu1 %v1868_v62, %s3758_s26  ;;  %v2230_v21 = vsel %vm2228_vm5, %v2192_v11, 0  ;;  %v1173_v11 = vrot.slane %v1171_v20, 1 }
  0xde   : > { %v4421_v49 = vpop.permute.xlu2 %987  ;;  %1893 = vrot.lane.b32.xlu0 %v1856_v53, %s3758_s26  ;;  %v3700_v53 = vor.u32 %v3699_v36, %v3698_v28  ;;  %3479 = vmatpush.bf16.msra.mxu2 %v2230_v21  ;;  %v1616_v28 = vshrl.u32 %v4416_v42, 16  ;;  %v1831_v36 = vrot.slane %v4412_v50, 1 }
  0xdf   : > { %v882_v39 = vpop.permute.xlu1 %881  ;;  %3480 = vmatpush.bf16.msra.mxu3 %v2230_v21  ;;  %2237 = vmatpush.bf16.msra.mxu0 %v2230_v21 }
  0xe0   : > { %v4431_v43 = vsel %vm1940_vm3, %v1939_v6, %v882_v39  ;;  %v880_v12 = vpop.permute.xlu0 %879  ;;  %v1620_v6 = vrot.slane %v1618_v23, 1  ;;  %3478 = vmatpush.bf16.msra.mxu1 %v2230_v21  ;;  %v1842_v39 = vrot.slane %v3700_v53, 1 }
  0xe1   : > { %v4446_v40 = vsel %vm1940_vm3, %v1937_v48, %v880_v12 }
  0xe2   : > { %v1621_v44 = vor.u32 %v1620_v6, %v1616_v28  ;;  %v1844_v12 = vsel %vm802_vm1, %v1842_v39, %v1843_v63  ;;  %v4519_v6 = vld [vmem:[%s3804_s19 + $0x90] sm:$0xff]  }
  0xe4   : > { %1373 = vrot.lane.b32.xlu2 %v1332_v2, %s3755_s23  ;;  %v4481_v2 = vld [vmem:[%s3804_s19 + $0xb4] sm:$0xff]  }
  0xe5   : > { %1365 = vrot.lane.b32.xlu1 %v1320_v55, %s3755_s23  ;;  %v1625_v55 = vrot.slane %v1623_v19, 1  ;;  %v1214_v53 = vshll.u32 %v4481_v2, 16  ;;  %v1212_v63 = vshrl.u32 %v4481_v2, 16 }
  0xe6   : > { %v4457_v58 = vpop.permute.xlu2 %1379  ;;  %1245 = vrot.lane.b32.xlu0 %v1114_v51, %s3756_s24  ;;  %v1832_v51 = vsel %vm802_vm1, %v1830_v5, %v1831_v36 }
  0xe7   : > { %v968_v62 = vpop.permute.xlu1 %967  ;;  %v1626_v37 = vsel %vm529_vm0, %v1621_v44, %v1625_v55  ;;  %v1216_v19 = vrot.slane %v1214_v53, 1  ;;  %v1678_v44 = vshll.u32 %v4519_v6, 16  ;;  %v3469_v53 = vld [vmem:[%s3804_s19 + $0x90] sm:$0xf0] }
  0xe8   : > { %v4465_v9 = vsel %vm1973_vm4, %v4319_v24, %v968_v62  ;;  %v966_v7 = vpop.permute.xlu0 %965  ;;  %v3286_v24 = vld [vmem:[%s5305_s1 + $0x8] sm:$0xff] }
  0xe9   : > { %v4469_v45 = vsel %vm1973_vm4, %v4217_v35, %v966_v7  ;;  %v1166_v35 = vshll.u32 %v4440_v4, 16  ;;  %3482 = vmatpush.bf16.msra.mxu2 %v3286_v24  ;;  %3483 = vmatpush.bf16.msra.mxu3 %v3286_v24  ;;  %v3706_v7 = vor.u32 %v3705_v16, %v3704_v46  ;;  %v1217_v55 = vor.u32 %v1216_v19, %v1212_v63 }
  0xea   : > { %2238 = vmatpush.bf16.msra.mxu0 %v3286_v24  ;;  %3481 = vmatpush.bf16.msra.mxu1 %v3286_v24  ;;  %v1070_v19 = vshll.u32 %v4100_v8, 16 }
  0xeb   : > { %v1168_v30 = vrot.slane %v1166_v35, 1  ;;  %v1357_v5 = vrot.slane %v3706_v7, 1 }
  0xec   : > { %1749 = vrot.lane.b32.xlu2 %v1578_v60, %s3759_s27  ;;  %v3204_v60 = vld [vmem:[%s3804_s19 + $0x98] sm:$0x1] }
  0xed   : > { %1485 = vrot.lane.b32.xlu1 %v4416_v42, %s3757_s25  ;;  %v3285_v42 = vld [vmem:[%s5305_s1] sm:$0xff]  ;;  %v1169_v23 = vor.u32 %v1168_v30, %v1164_v18  ;;  %v1533_v0 = vunpack.c.l.b16 %v3204_v60  ;;  %v1676_v30 = vshrl.u32 %v4519_v6, 16 }
  0xee   : > { %v4486_v54 = vpop.permute.xlu2 %1499  ;;  %1477 = vrot.lane.b32.xlu0 %v4375_v32, %s3757_s25  ;;  %v3144_v32 = vld [vmem:[%s3804_s19 + $0xbc] sm:$0x1]  ;;  %3485 = vmatpush.bf16.msra.mxu2 %v3285_v42 }
  0xef   : > { %v974_v48 = vpop.permute.xlu1 %973  ;;  %3486 = vmatpush.bf16.msra.mxu3 %v3285_v42  ;;  %2239 = vmatpush.bf16.msra.mxu0 %v3285_v42  ;;  %v1025_v33 = vunpack.c.l.b16 %v3144_v32  ;;  %v1174_v21 = vsel %vm529_vm0, %v1169_v23, %v1173_v11  ;;  %v4528_v46 = vpack.c.b16 %v1533_v0, %v1533_v0  ;;  %v3475_v23 = vld [vmem:[%s3804_s19 + $0xc0] sm:$0xf0]  ;;  %v3476_v11 = vld [vmem:[%s3804_s19 + $0xc0] sm:$0xe] }
  0xf0   : > { %v4497_v50 = vsel %vm1973_vm4, %v4350_v22, %v974_v48  ;;  %v4502_v27 = vpop.permute.xlu0 %971  ;;  %v3708_v22 = vld [vmem:[%s3804_s19 + $0x84] sm:$0xe]  ;;  %3484 = vmatpush.bf16.msra.mxu1 %v3285_v42 }
  0xf1   : > { %v1041_v59 = vpack.c.b16 %v1025_v33, %v1025_v33  ;;  %v3709_v39 = vor.u32 %v3708_v22, %v4443_v34  ;;  %v1346_v34 = vrot.slane %v4477_v47, 1  ;;  %v1683_v20 = vshll.u32 %v4528_v46, 16  ;;  %v3208_v47 = vld [vmem:[%s3804_s19 + $0xc8] sm:$0x1] }
  0xf2   : > { %v1537_v16 = vunpack.c.l.b16 %v3208_v47 }
  0xf3   : > { %v1219_v35 = vshll.u32 %v1041_v59, 16  ;;  %v1358_v36 = vrot.slane %v1041_v59, 1  ;;  %v1345_v48 = vrot.slane %v3709_v39, 1  ;;  %v1685_v22 = vrot.slane %v1683_v20, 1  ;;  %v3470_v59 = vld [vmem:[%s3804_s19 + $0x90] sm:$0xe] }
  0xf4   : > { %1885 = vrot.lane.b32.xlu2 %v1844_v12, %s3758_s26  ;;  %v1553_v0 = vpack.c.b16 %v1537_v16, %v1537_v16  ;;  %v3136_v39 = vld [vmem:[%s3804_s19 + $0x5c] sm:$0x1] }
  0xf5   : > { %1877 = vrot.lane.b32.xlu1 %v1832_v51, %s3758_s26  ;;  %v1221_v42 = vrot.slane %v1219_v35, 1  ;;  %v1359_v18 = vsel %vm802_vm1, %v1357_v5, %v1358_v36  ;;  %v3653_v35 = vld [vmem:[%s3804_s19 + $0x60] sm:$0xff]  }
  0xf6   : > { %v4510_v62 = vpop.permute.xlu2 %1891  ;;  %1757 = vrot.lane.b32.xlu0 %v1626_v37, %s3759_s27  ;;  %v4550_v37 = vld [vmem:[%s3804_s19 + $0xc0] sm:$0xff]   ;;  %v1925_v5 = vsel %vm1907_vm2, %v3653_v35, %v4141_v25  ;;  %v1731_v25 = vshll.u32 %v1553_v0, 16  ;;  %v1870_v16 = vrot.slane %v1553_v0, 1 }
  0xf7   : > { %v4514_v31 = vpop.permute.xlu1 %979  ;;  %v1222_v51 = vsel %vm529_vm0, %v1217_v55, %v1221_v42  ;;  %v1726_v7 = vshll.u32 %v4550_v37, 16  ;;  %v3654_v55 = vld [vmem:[%s3804_s19 + $0x90] sm:$0xff]  }
  0xf8   : > { %v978_v28 = vpop.permute.xlu0 %977  ;;  %v1933_v42 = vsel %vm1907_vm2, %v3654_v55, %v4253_v26 }
  0xf9   : > { %v4523_v24 = vsel %vm1973_vm4, %v4245_v15, %v978_v28  ;;  %v3477_v28 = vor.u32 %v3476_v11, %v3475_v23  ;;  %v1728_v20 = vrot.slane %v1726_v7, 1  ;;  %v1858_v23 = vrot.slane %v4528_v46, 1 }
  0xfa   : > { %v1118_v11 = vshll.u32 %v4111_v3, 16  ;;  %v1733_v7 = vrot.slane %v1731_v25, 1  ;;  %v3200_v25 = vld [vmem:[%s3804_s19 + $0x68] sm:$0x1] }
  0xfb   : > { %v1869_v47 = vrot.slane %v3477_v28, 1 }
  0xfc   : > { %1255 = vrot.lane.b32.xlu2 %v1174_v21, %s3756_s24 }
  0xfd   : > { %991 = vrot.lane.b32.xlu1 %v4481_v2, %s3754_s22  ;;  %v1680_v2 = vrot.slane %v1678_v44, 1  ;;  %v3471_v44 = vor.u32 %v3470_v59, %v3469_v53  ;;  %v1966_v53 = vsel %vm1940_vm3, %v1933_v42, %v4397_v57  ;;  %v1871_v0 = vsel %vm802_vm1, %v1869_v47, %v1870_v16 }
  0xfe   : > { %v4533_v15 = vpop.permute.xlu2 %1243  ;;  %983 = vrot.lane.b32.xlu0 %v4440_v4, %s3754_s22  ;;  %v1347_v4 = vsel %vm802_vm1, %v1345_v48, %v1346_v34  ;;  %v3132_v48 = vld [vmem:[%s3804_s19 + $0x2c] sm:$0x1]  ;;  %v3711_v34 = vld [vmem:[%s3804_s19 + $0x24] sm:$0xe] }
  0xff   : > { %v4538_v12 = vpop.permute.xlu1 %1259  ;;  %v4547_v33 = vor.u32 %v1680_v2, %v1676_v30  ;;  %v1017_v30 = vunpack.c.l.b16 %v3136_v39  ;;  %v1724_v2 = vshrl.u32 %v4550_v37, 16  ;;  %v3712_v57 = vor.u32 %v3711_v34, %v4103_v10 }
 0x100   : > { %v1252_v32 = vpop.permute.xlu0 %1251  ;;  %v1999_v39 = vsel %vm1973_vm4, %v1966_v53, %v4421_v49  ;;  %v1072_v34 = vrot.slane %v1070_v19, 1  ;;  %v1529_v53 = vunpack.c.l.b16 %v3200_v25  ;;  %v3145_v25 = vld [vmem:[%s3804_s19 + $0xc8] sm:$0x1] }
 0x101   : > { %v1686_v63 = vsel %vm529_vm0, %v4547_v33, %v1685_v22  ;;  %v4590_v59 = vor.u32 %v1728_v20, %v1724_v2  ;;  %v2032_v42 = vsel %vm2006_vm6, %v1999_v39, %v4538_v12  ;;  %v3714_v20 = vld [vmem:[%s3804_s19 + $0x54] sm:$0xe]  ;;  %v3458_v39 = vld [vmem:[%s3804_s19 + $0x30] sm:$0xe] }
 0x103   : > { %v1734_v49 = vsel %vm529_vm0, %v4590_v59, %v1733_v7  ;;  %v3401_v7 = vld [vmem:[%s3804_s19 + $0x60] sm:$0xff]  }
 0x104   : > { %1391 = vrot.lane.b32.xlu2 %v1359_v18, %s3755_s23  ;;  %v1958_v18 = vsel %vm1940_vm3, %v1925_v5, %v4380_v1  ;;  %v1857_v1 = vrot.slane %v3471_v44, 1 }
 0x105   : > { %1383 = vrot.lane.b32.xlu1 %v1347_v4, %s3755_s23  ;;  %v1991_v4 = vsel %vm1973_vm4, %v1958_v18, %v4514_v31  ;;  %v4588_v31 = vpack.c.b16 %v1017_v30, %v1017_v30 }
 0x106   : > { %v4555_v60 = vpop.permute.xlu2 %1475  ;;  %1263 = vrot.lane.b32.xlu0 %v1222_v51, %s3756_s24  ;;  %v1013_v51 = vunpack.c.l.b16 %v3132_v48  ;;  %v2024_v22 = vsel %vm2006_vm6, %v1991_v4, %v1252_v32  ;;  %v1859_v5 = vsel %vm802_vm1, %v1857_v1, %v1858_v23  ;;  %v1116_v48 = vshrl.u32 %v4111_v3, 16  ;;  %v3196_v1 = vld [vmem:[%s3804_s19 + $0x38] sm:$0x1] }
 0x107   : > { %v1492_v21 = vpop.permute.xlu1 %1491  ;;  %v2057_v46 = vsel %vm2039_vm7, %v2024_v22, %v4457_v58  ;;  %v1120_v58 = vrot.slane %v1118_v11, 1  ;;  %v1123_v55 = vshll.u32 %v4588_v31, 16  ;;  %v1321_v3 = vrot.slane %v3712_v57, 1  ;;  %v3457_v57 = vld [vmem:[%s3804_s19 + $0x30] sm:$0xf0] }
 0x108   : > { %v1388_v36 = vpop.permute.xlu0 %1387  ;;  %v1029_v28 = vpack.c.b16 %v1013_v51, %v1013_v51 }
 0x109   : > { %v1121_v47 = vor.u32 %v1120_v58, %v1116_v48  ;;  %v1334_v58 = vrot.slane %v4588_v31, 1 }
 0x10a   : > { %v1322_v18 = vrot.slane %v1029_v28, 1  ;;  %v1075_v30 = vshll.u32 %v1029_v28, 16  ;;  %v1525_v28 = vunpack.c.l.b16 %v3196_v1  ;;  %v1983_v1 = vsel %vm1973_vm4, %v4229_v52, %v4502_v27 }
 0x10c   : > { %1767 = vrot.lane.b32.xlu2 %v1686_v63, %s3759_s27  ;;  %v2090_v63 = vsel %vm2072_vm8, %v2057_v46, %v1492_v21  ;;  %v1068_v21 = vshrl.u32 %v4100_v8, 16  ;;  %v1125_v8 = vrot.slane %v1123_v55, 1  ;;  %v1077_v16 = vrot.slane %v1075_v30, 1  ;;  %v3399_v46 = vld [vmem:[%s3804_s19 + $0x30] sm:$0xff]  }
 0x10d   : > { %1503 = vrot.lane.b32.xlu1 %v4550_v37, %s3757_s25  ;;  %v1541_v55 = vpack.c.b16 %v1525_v28, %v1525_v28 }
 0x10e   : > { %v4582_v26 = vpop.permute.xlu2 %1755  ;;  %1495 = vrot.lane.b32.xlu0 %v4519_v6, %s3757_s25  ;;  %v1073_v12 = vor.u32 %v1072_v34, %v1068_v21  ;;  %v1126_v11 = vsel %vm529_vm0, %v1121_v47, %v1125_v8 }
 0x10f   : > { %v1772_v32 = vpop.permute.xlu1 %1771  ;;  %v1587_v31 = vshll.u32 %v1541_v55, 16 }
 0x110   : > { %v1764_v35 = vpop.permute.xlu0 %1763 }
 0x111   : > { %v2123_v44 = vsel %vm2105_vm9, %v2090_v63, %v1764_v35  ;;  %v1630_v63 = vshll.u32 %v3401_v7, 16  ;;  %v4641_v35 = vpack.c.b16 %v1529_v53, %v1529_v53  ;;  %v2016_v53 = vsel %vm2006_vm6, %v1983_v1, %v4533_v15  ;;  %v3205_v1 = vld [vmem:[%s3804_s19 + $0xa4] sm:$0x1] }
 0x112   : > { %v2156_v10 = vsel %vm2138_vm10, %v2123_v44, %v4510_v62  ;;  %v2065_v62 = vsel %vm2039_vm7, %v2032_v42, %v1388_v36  ;;  %v1323_v36 = vsel %vm802_vm1, %v1321_v3, %v1322_v18  ;;  %v1582_v44 = vshll.u32 %v3399_v46, 16 }
 0x113   : > { %3242 = vmatmul.msk.bf16.vlgmr.msra.gmra.mxu2 %vm2195_vm11, %v2156_v10  ;;  %v2098_v4 = vsel %vm2072_vm8, %v2065_v62, %v4486_v54  ;;  %v1078_v54 = vsel %vm529_vm0, %v1073_v12, %v1077_v16  ;;  %v3459_v10 = vor.u32 %v3458_v39, %v3457_v57  ;;  %v1632_v21 = vrot.slane %v1630_v63, 1  ;;  %v3445_v63 = vld [vmem:[%s3804_s19 + $0x90] sm:$0xf0] }
 0x114   : > { %1903 = vrot.lane.b32.xlu2 %v1871_v0, %s3758_s26  ;;  %v2131_v51 = vsel %vm2105_vm9, %v2098_v4, %v1772_v32  ;;  %v3715_v0 = vor.u32 %v3714_v20, %v4114_v29  ;;  %v1635_v34 = vshll.u32 %v4641_v35, 16  ;;  %v1580_v42 = vshrl.u32 %v3399_v46, 16 }
 0x115   : > { %1895 = vrot.lane.b32.xlu1 %v1859_v5, %s3758_s26  ;;  %v1584_v3 = vrot.slane %v1582_v44, 1  ;;  %v1833_v30 = vrot.slane %v3459_v10, 1  ;;  %v1834_v62 = vrot.slane %v1541_v55, 1  ;;  %v1589_v16 = vrot.slane %v1587_v31, 1 }
 0x116   : > { %v4616_v2 = vpop.permute.xlu2 %981  ;;  %1775 = vrot.lane.b32.xlu0 %v1734_v49, %s3759_s27  ;;  %v1333_v48 = vrot.slane %v3715_v0, 1  ;;  %v1628_v49 = vshrl.u32 %v3401_v7, 16  ;;  %v1637_v8 = vrot.slane %v1635_v34, 1 }
 0x117   : > { %v4620_v19 = vpop.permute.xlu1 %1235  ;;  %v1585_v4 = vor.u32 %v1584_v3, %v1580_v42 }
 0x118   : > { %v1900_v22 = vpop.permute.xlu0 %1899  ;;  %v1335_v18 = vsel %vm802_vm1, %v1333_v48, %v1334_v58  ;;  %v1633_v47 = vor.u32 %v1632_v21, %v1628_v49  ;;  %v2008_v28 = vsel %vm2006_vm6, %v4331_v38, %v4620_v19  ;;  %v1846_v58 = vrot.slane %v4641_v35, 1  ;;  %v4694_v35 = vld [vmem:[%s3804_s19 + $0xcc] sm:$0xf0] }
 0x119   : > { %v2164_v23 = vsel %vm2138_vm10, %v2131_v51, %v1900_v22  ;;  %v3463_v51 = vld [vmem:[%s3804_s19 + $0x60] sm:$0xf0]  ;;  %v3464_v22 = vld [vmem:[%s3804_s19 + $0x60] sm:$0xe]  ;;  %v1590_v27 = vsel %vm529_vm0, %v1585_v4, %v1589_v16 }
 0x11a   : > { %3246 = vmatmul.msk.bf16.vlgmr.msra.gmra.mxu3 %vm2195_vm11, %v2164_v23  ;;  %v3465_v0 = vor.u32 %v3464_v22, %v3463_v51  ;;  %v3451_v16 = vld [vmem:[%s3804_s19 + $0xc0] sm:$0xf0]  ;;  %v3452_v51 = vld [vmem:[%s3804_s19 + $0xc0] sm:$0xe] }
 0x11c   : > { %1367 = vrot.lane.b32.xlu2 %v1323_v36, %s3755_s23  ;;  %v1835_v36 = vsel %vm802_vm1, %v1833_v30, %v1834_v62  ;;  %v1845_v19 = vrot.slane %v3465_v0, 1 }
 0x11d   : > { %1247 = vrot.lane.b32.xlu1 %v1126_v11, %s3756_s24  ;;  %v3141_v11 = vld [vmem:[%s3804_s19 + $0x98] sm:$0x1] }
 0x11e   : > { %v4637_v32 = vpop.permute.xlu2 %1261  ;;  %1239 = vrot.lane.b32.xlu0 %v1078_v54, %s3756_s24  ;;  %v1026_v54 = vunpack.c.l.b16 %v3145_v25  ;;  %v1022_v57 = vunpack.c.l.b16 %v3141_v11  ;;  %v1847_v3 = vsel %vm802_vm1, %v1845_v19, %v1846_v58  ;;  %v3209_v25 = vld [vmem:[%s3804_s19 + $0xd4] sm:$0x1] }
 0x11f   : > { %v1372_v5 = vpop.permute.xlu1 %1371  ;;  %v1538_v11 = vunpack.c.l.b16 %v3209_v25 }
 0x120   : > { %v1364_v29 = vpop.permute.xlu0 %1363  ;;  %v4676_v44 = vpack.c.b16 %v1026_v54, %v1026_v54  ;;  %v1534_v54 = vunpack.c.l.b16 %v3205_v1 }
 0x121   : > { %v2041_v39 = vsel %vm2039_vm7, %v2008_v28, %v1364_v29  ;;  %v1038_v29 = vpack.c.b16 %v1022_v57, %v1022_v57 }
 0x122   : > { %v2074_v55 = vsel %vm2072_vm8, %v2041_v39, %v4555_v60  ;;  %v3192_v60 = vld [vmem:[%s3804_s19 + $0xcc] sm:$0xff]   ;;  %v1361_v57 = vrot.slane %v4676_v44, 1 }
 0x123   : > { %v1349_v30 = vrot.slane %v1038_v29, 1  ;;  %v1183_v62 = vshll.u32 %v1038_v29, 16  ;;  %v1738_v28 = vshll.u32 %v3192_v60, 16  ;;  %v1736_v19 = vshrl.u32 %v3192_v60, 16 }
 0x124   : > { %1487 = vrot.lane.b32.xlu2 %v3401_v7, %s3757_s25  ;;  %v1638_v7 = vsel %vm529_vm0, %v1633_v47, %v1637_v8  ;;  %v3184_v47 = vld [vmem:[%s3804_s19 + $0x9c] sm:$0xff]  }
 0x125   : > { %1479 = vrot.lane.b32.xlu1 %v3399_v46, %s3757_s25  ;;  %v2049_v46 = vsel %vm2039_vm7, %v2016_v53, %v1372_v5  ;;  %v3446_v5 = vld [vmem:[%s3804_s19 + $0x90] sm:$0xe]  ;;  %v3716_v8 = vld [vmem:[%s3804_s19 + $0x9c] sm:$0xf0]  ;;  %v3453_v53 = vor.u32 %v3452_v51, %v3451_v16  ;;  %v1740_v58 = vrot.slane %v1738_v28, 1 }
 0x126   : > { %v4649_v20 = vpop.permute.xlu2 %1493  ;;  %1375 = vrot.lane.b32.xlu0 %v1335_v18, %s3755_s23  ;;  %v3447_v49 = vor.u32 %v3446_v5, %v3445_v63  ;;  %v3133_v63 = vld [vmem:[%s3804_s19 + $0x38] sm:$0x1]  ;;  %v1690_v5 = vshll.u32 %v3184_v47, 16 }
 0x127   : > { %v1748_v12 = vpop.permute.xlu1 %1747 }
 0x128   : > { %v1484_v23 = vpop.permute.xlu0 %1483  ;;  %v2107_v21 = vsel %vm2105_vm9, %v2074_v55, %v1748_v12  ;;  %v1348_v18 = vrot.slane %v3447_v49, 1 }
 0x129   : > { %v2082_v52 = vsel %vm2072_vm8, %v2049_v46, %v1484_v23  ;;  %v3717_v23 = vld [vmem:[%s3804_s19 + $0x9c] sm:$0xe]  ;;  %v3137_v46 = vld [vmem:[%s3804_s19 + $0x68] sm:$0x1] }
 0x12a   : > { %v2115_v38 = vsel %vm2105_vm9, %v2082_v52, %v4582_v26  ;;  %v1231_v26 = vshll.u32 %v4676_v44, 16  ;;  %v1350_v4 = vsel %vm802_vm1, %v1348_v18, %v1349_v30  ;;  %v4721_v52 = vpack.c.b16 %v1538_v11, %v1538_v11 }
 0x12b   : > { %v1018_v39 = vunpack.c.l.b16 %v3137_v46  ;;  %v1741_v18 = vor.u32 %v1740_v58, %v1736_v19 }
 0x12c   : > { %1879 = vrot.lane.b32.xlu2 %v1835_v36, %s3758_s26  ;;  %v1185_v36 = vrot.slane %v1183_v62, 1  ;;  %v1743_v55 = vshll.u32 %v4721_v52, 16 }
 0x12d   : > { %1759 = vrot.lane.b32.xlu1 %v1638_v7, %s3759_s27 }
 0x12e   : > { %v4672_v15 = vpop.permute.xlu2 %1773  ;;  %1751 = vrot.lane.b32.xlu0 %v1590_v27, %s3759_s27  ;;  %v1186_v7 = vsel %vm529_vm0, %v4547_v33, %v1185_v36  ;;  %v1360_v27 = vrot.slane %v3453_v53, 1  ;;  %v1550_v33 = vpack.c.b16 %v1534_v54, %v1534_v54  ;;  %v1745_v30 = vrot.slane %v1743_v55, 1 }
 0x12f   : > { %v1884_v48 = vpop.permute.xlu1 %1883 }
 0x130   : > { %v2148_v10 = vsel %vm2138_vm10, %v2115_v38, %v1884_v48  ;;  %v1876_v34 = vpop.permute.xlu0 %1875  ;;  %v3718_v48 = vor.u32 %v3717_v23, %v3716_v8  ;;  %v1362_v29 = vsel %vm802_vm1, %v1360_v27, %v1361_v57  ;;  %v1861_v49 = vrot.slane %v1550_v33, 1  ;;  %v4750_v23 = vld [vmem:[%s3804_s19 + $0x3c] sm:$0xf0]  ;;  %v3439_v27 = vld [vmem:[%s3804_s19 + $0x60] sm:$0xf0] }
 0x131   : > { %3238 = vmatmul.msk.bf16.vlgmr.msra.gmra.mxu1 %vm2195_vm11, %v2148_v10  ;;  %v2140_v42 = vsel %vm2138_vm10, %v2107_v21, %v1876_v34  ;;  %v1014_v10 = vunpack.c.l.b16 %v3133_v63  ;;  %v4729_v21 = vpack.c.b16 %v1018_v39, %v1018_v39  ;;  %v1688_v34 = vshrl.u32 %v3184_v47, 16  ;;  %v5312_v39 = vld [vmem:[#allocation3_spill] sm:$0xff] }
 0x132   : > { %3234 = vmatmul.msk.bf16.vlgmr.msra.gmra.mxu0 %vm2195_vm11, %v2140_v42  ;;  %v1860_v44 = vrot.slane %v3718_v48, 1  ;;  %v1692_v42 = vrot.slane %v1690_v5, 1  ;;  %v1746_v1 = vsel %vm529_vm0, %v1741_v18, %v1745_v30  ;;  %v3197_v48 = vld [vmem:[%s3804_s19 + $0x44] sm:$0x1] }
 0x133   : > { %v4733_v62 = vpack.c.b16 %v1014_v10, %v1014_v10 }
 0x134   : > { %993 = vrot.lane.b32.xlu2 %v4550_v37, %s3754_s22  ;;  %v1233_v37 = vrot.slane %v1231_v26, 1  ;;  %v1695_v26 = vshll.u32 %v1550_v33, 16  ;;  %v1693_v36 = vor.u32 %v1692_v42, %v1688_v34  ;;  %v1873_v33 = vrot.slane %v4721_v52, 1  ;;  %v5313_v52 = vld [vmem:[#allocation2_spill] sm:$0xff] }
 0x135   : > { %985 = vrot.lane.b32.xlu1 %v4519_v6, %s3754_s22 }
 0x136   : > { %v4699_v31 = vpop.permute.xlu2 %1237  ;;  %1887 = vrot.lane.b32.xlu0 %v1847_v3, %s3758_s26  ;;  %v1234_v6 = vsel %vm529_vm0, %v4590_v59, %v1233_v37  ;;  %v3720_v3 = vld [vmem:[%s3804_s19 + $0xcc] sm:$0xe]  ;;  %v1135_v37 = vshll.u32 %v4729_v21, 16 }
 0x137   : > { %v4704_v12 = vpop.permute.xlu1 %1253  ;;  %v3721_v53 = vor.u32 %v3720_v3, %v4694_v35  ;;  %v3440_v35 = vld [vmem:[%s3804_s19 + $0x60] sm:$0xe] }
 0x138   : > { %v990_v22 = vpop.permute.xlu0 %989  ;;  %v3441_v10 = vor.u32 %v3440_v35, %v3439_v27  ;;  %v3726_v27 = vld [vmem:[%s3804_s19 + $0x3c] sm:$0xe] }
 0x139   : > { %v1872_v5 = vrot.slane %v3721_v53, 1 }
 0x13a   : > { %v1336_v30 = vrot.slane %v3441_v10, 1 }
 0x13c   : > { %1385 = vrot.lane.b32.xlu2 %v1350_v4, %s3755_s23  ;;  %v1862_v4 = vsel %vm802_vm1, %v1860_v44, %v1861_v49  ;;  %v3201_v49 = vld [vmem:[%s3804_s19 + $0x74] sm:$0x1] }
 0x13d   : > { %1265 = vrot.lane.b32.xlu1 %v1234_v6, %s3756_s24  ;;  %v1993_v6 = vsel %vm1973_vm4, %v4370_v17, %v4616_v2  ;;  %v4765_v17 = vld [vmem:[%s3804_s19 + $0x6c] sm:$0xff]   ;;  %v1530_v18 = vunpack.c.l.b16 %v3201_v49 }
 0x13e   : > { %v4719_v0 = vpop.permute.xlu2 %1373  ;;  %1257 = vrot.lane.b32.xlu0 %v1186_v7, %s3756_s24  ;;  %v2026_v7 = vsel %vm2006_vm6, %v1993_v6, %v4704_v12  ;;  %v4768_v2 = vld [vmem:[%s3804_s19 + $0x6c] sm:$0xf0] }
 0x13f   : > { %v1390_v59 = vpop.permute.xlu1 %1389 }
 0x140   : > { %v1382_v38 = vpop.permute.xlu0 %1381 }
 0x141   : > { %v2059_v28 = vsel %vm2039_vm7, %v2026_v7, %v1382_v38 }
 0x142   : > { %v2092_v38 = vsel %vm2072_vm8, %v2059_v28, %v4649_v20  ;;  %v1874_v20 = vsel %vm802_vm1, %v1872_v5, %v1873_v33 }
 0x144   : > { %1505 = vrot.lane.b32.xlu2 %v3192_v60, %s3757_s25  ;;  %v2001_v60 = vsel %vm1973_vm4, %v4301_v56, %v990_v22  ;;  %v1087_v56 = vshll.u32 %v4733_v62, 16  ;;  %v4747_v22 = vld [vmem:[%s3804_s19 + $0x3c] sm:$0xff]  }
 0x145   : > { %1497 = vrot.lane.b32.xlu1 %v3184_v47, %s3757_s25  ;;  %v1697_v47 = vrot.slane %v1695_v26, 1  ;;  %v2034_v51 = vsel %vm2006_vm6, %v2001_v60, %v4637_v32  ;;  %v1137_v32 = vrot.slane %v1135_v37, 1  ;;  %v1526_v26 = vunpack.c.l.b16 %v3197_v48 }
 0x146   : > { %1393 = vrot.lane.b32.xlu0 %v1362_v29, %s3755_s23  ;;  %v4739_v25 = vpop.permute.xlu2 %1749  ;;  %v2067_v11 = vsel %vm2039_vm7, %v2034_v51, %v1390_v59  ;;  %v1089_v59 = vrot.slane %v1087_v56, 1  ;;  %v3433_v29 = vld [vmem:[%s3804_s19 + $0x30] sm:$0xf0]  ;;  %v1337_v60 = vrot.slane %v4729_v21, 1  ;;  %v1546_v51 = vpack.c.b16 %v1530_v18, %v1530_v18 }
 0x147   : > { %v1766_v8 = vpop.permute.xlu1 %1765  ;;  %v1698_v46 = vsel %vm529_vm0, %v1693_v36, %v1697_v47  ;;  %v1138_v63 = vsel %vm529_vm0, %v5312_v39, %v1137_v32  ;;  %v1542_v37 = vpack.c.b16 %v1526_v26, %v1526_v26  ;;  %v1592_v6 = vshrl.u32 %v4747_v22, 16 }
 0x148   : > { %v1502_v16 = vpop.permute.xlu0 %1501  ;;  %v2125_v58 = vsel %vm2105_vm9, %v2092_v38, %v1766_v8  ;;  %v1090_v42 = vsel %vm529_vm0, %v5313_v52, %v1089_v59  ;;  %v1594_v8 = vshll.u32 %v4747_v22, 16  ;;  %v1338_v56 = vsel %vm802_vm1, %v1336_v30, %v1337_v60 }
 0x149   : > { %v2100_v54 = vsel %vm2072_vm8, %v2067_v11, %v1502_v16  ;;  %v1325_v16 = vrot.slane %v4733_v62, 1  ;;  %v1599_v11 = vshll.u32 %v1542_v37, 16  ;;  %v1640_v32 = vshrl.u32 %v4765_v17, 16 }
 0x14a   : > { %v2133_v57 = vsel %vm2105_vm9, %v2100_v54, %v4672_v15  ;;  %v3434_v15 = vld [vmem:[%s3804_s19 + $0x30] sm:$0xe]  ;;  %v1596_v21 = vrot.slane %v1594_v8, 1  ;;  %v1647_v7 = vshll.u32 %v1546_v51, 16  ;;  %v3723_v54 = vld [vmem:[%s3804_s19 + $0x6c] sm:$0xe] }
 0x14b   : > { %v3435_v3 = vor.u32 %v3434_v15, %v3433_v29  ;;  %v3724_v33 = vor.u32 %v3723_v54, %v4768_v2  ;;  %v1837_v49 = vrot.slane %v1542_v37, 1 }
 0x14c   : > { %1897 = vrot.lane.b32.xlu2 %v1862_v4, %s3758_s26  ;;  %v1642_v4 = vshll.u32 %v4765_v17, 16  ;;  %v1649_v59 = vrot.slane %v1647_v7, 1  ;;  %v1597_v35 = vor.u32 %v1596_v21, %v1592_v6 }
 0x14d   : > { %1777 = vrot.lane.b32.xlu1 %v1746_v1, %s3759_s27  ;;  %v1324_v47 = vrot.slane %v3435_v3, 1  ;;  %v1848_v10 = vrot.slane %v3724_v33, 1 }
 0x14e   : > { %1769 = vrot.lane.b32.xlu0 %v1698_v46, %s3759_s27  ;;  %v4787_v44 = vpop.permute.xlu2 %1885  ;;  %v1644_v53 = vrot.slane %v1642_v4, 1 }
 0x14f   : > { %v1902_v12 = vpop.permute.xlu1 %1901  ;;  %v1326_v62 = vsel %vm802_vm1, %v1324_v47, %v1325_v16 }
 0x150   : > { %v2166_v19 = vsel %vm2138_vm10, %v2133_v57, %v1902_v12  ;;  %v1894_v55 = vpop.permute.xlu0 %1893  ;;  %v1645_v28 = vor.u32 %v1644_v53, %v1640_v32  ;;  %v1601_v12 = vrot.slane %v1599_v11, 1 }
 0x151   : > { %3247 = vmatmul.msk.bf16.gmra.mxu3 %vm2195_vm11, %v2166_v19  ;;  %v2158_v34 = vsel %vm2138_vm10, %v2125_v58, %v1894_v55  ;;  %v3727_v19 = vor.u32 %v3726_v27, %v4750_v23 }
 0x152   : > { %3243 = vmatmul.msk.bf16.gmra.mxu2 %vm2195_vm11, %v2158_v34  ;;  %v1650_v39 = vsel %vm529_vm0, %v1645_v28, %v1649_v59  ;;  %v1602_v5 = vsel %vm529_vm0, %v1597_v35, %v1601_v12 }
 0x153   : > { %v1836_v15 = vrot.slane %v3727_v19, 1 }
 0x154   : > { %1249 = vrot.lane.b32.xlu2 %v1138_v63, %s3756_s24 }
 0x155   : > { %1241 = vrot.lane.b32.xlu1 %v1090_v42, %s3756_s24 }
 0x156   : > { %1905 = vrot.lane.b32.xlu0 %v1874_v20, %s3758_s26  ;;  %v1256_v46 = vpop.permute.xlu2 %1255 }
 0x157   : > { %v1366_v36 = vpop.permute.xlu1 %1365 }
 0x158   : > { %v1246_v1 = vpop.permute.xlu0 %1245 }
 0x159   : > { %v2018_v58 = vsel %vm2006_vm6, %v4497_v50, %v1246_v1 }
 0x15a   : > { %v2051_v29 = vsel %vm2039_vm7, %v2018_v58, %v4719_v0  ;;  %v1838_v0 = vsel %vm802_vm1, %v1836_v15, %v1837_v49 }
 0x15c   : > { %1481 = vrot.lane.b32.xlu2 %v4747_v22, %s3757_s25  ;;  %v2010_v22 = vsel %vm2006_vm6, %v4469_v45, %v4699_v31  ;;  %v1849_v45 = vrot.slane %v1546_v51, 1 }
 0x15d   : > { %1377 = vrot.lane.b32.xlu1 %v1338_v56, %s3755_s23  ;;  %v2043_v48 = vsel %vm2039_vm7, %v2010_v22, %v1366_v36 }
 0x15e   : > { %1369 = vrot.lane.b32.xlu0 %v1326_v62, %s3755_s23  ;;  %v1392_v55 = vpop.permute.xlu2 %1391 }
 0x15f   : > { %v1486_v57 = vpop.permute.xlu1 %1485 }
 0x160   : > { %v1478_v63 = vpop.permute.xlu0 %1477  ;;  %v2084_v50 = vsel %vm2072_vm8, %v2051_v29, %v1486_v57 }
 0x161   : > { %v2076_v38 = vsel %vm2072_vm8, %v2043_v48, %v1478_v63 }
 0x162   : > { %v2109_v2 = vsel %vm2105_vm9, %v2076_v38, %v4739_v25 }
 0x164   : > { %1761 = vrot.lane.b32.xlu2 %v1650_v39, %s3759_s27 }
 0x165   : > { %1753 = vrot.lane.b32.xlu1 %v1602_v5, %s3759_s27 }
 0x166   : > { %1489 = vrot.lane.b32.xlu0 %v4765_v17, %s3757_s25  ;;  %v1850_v17 = vsel %vm802_vm1, %v1848_v10, %v1849_v45  ;;  %v1768_v26 = vpop.permute.xlu2 %1767 }
 0x167   : > { %v1878_v31 = vpop.permute.xlu1 %1877 }
 0x168   : > { %v2142_v23 = vsel %vm2138_vm10, %v2109_v2, %v1878_v31  ;;  %v1758_v34 = vpop.permute.xlu0 %1757 }
 0x169   : > { %3235 = vmatmul.msk.bf16.gmra.mxu0 %vm2195_vm11, %v2142_v23  ;;  %v2117_v52 = vsel %vm2105_vm9, %v2084_v50, %v1758_v34 }
 0x16a   : > { %v2150_v42 = vsel %vm2138_vm10, %v2117_v52, %v4787_v44 }
 0x16b   : > { %3239 = vmatmul.msk.bf16.gmra.mxu1 %vm2195_vm11, %v2150_v42 }
 0x16d   : > { %1889 = vrot.lane.b32.xlu1 %v1850_v17, %s3758_s26 }
 0x16e   : > { %1881 = vrot.lane.b32.xlu0 %v1838_v0, %s3758_s26  ;;  %v1904_v30 = vpop.permute.xlu2 %1903 }
 0x16f   : > { %v992_v25 = vpop.permute.xlu1 %991 }
 0x170   : > { %v984_v20 = vpop.permute.xlu0 %983  ;;  %v2003_v36 = vsel %vm1973_vm4, %v4446_v40, %v992_v25 }
 0x171   : > { %v1995_v60 = vsel %vm1973_vm4, %v4265_v14, %v984_v20 }
 0x172   : > { %v2028_v44 = vsel %vm2006_vm6, %v1995_v60, %v1256_v46  ;;  %v4860_v46 = vld [vmem:[%s5306_s2] ss:$0 sm:$0xff] }
 0x176   : > { %v1368_v47 = vpop.permute.xlu2 %1367 }
 0x177   : > { %v1384_v3 = vpop.permute.xlu1 %1383 }
 0x178   : > { %v1264_v18 = vpop.permute.xlu0 %1263  ;;  %v2061_v4 = vsel %vm2039_vm7, %v2028_v44, %v1384_v3 }
 0x179   : > { %v2036_v51 = vsel %vm2006_vm6, %v2003_v36, %v1264_v18 }
 0x17a   : > { %v2069_v6 = vsel %vm2039_vm7, %v2036_v51, %v1392_v55 }
 0x17e   : > { %v1488_v53 = vpop.permute.xlu2 %1487 }
 0x17f   : > { %v1504_v8 = vpop.permute.xlu1 %1503 }
 0x180   : > { %v1496_v37 = vpop.permute.xlu0 %1495  ;;  %v2102_v21 = vsel %vm2072_vm8, %v2069_v6, %v1504_v8 }
 0x181   : > { %v2094_v16 = vsel %vm2072_vm8, %v2061_v4, %v1496_v37 }
 0x182   : > { %v2127_v56 = vsel %vm2105_vm9, %v2094_v16, %v1768_v26 }
 0x186   : > { %v1880_v59 = vpop.permute.xlu2 %1879 }
 0x187   : > { %v1896_v1 = vpop.permute.xlu1 %1895 }
 0x188   : > { %v2160_v14 = vsel %vm2138_vm10, %v2127_v56, %v1896_v1  ;;  %v1776_v11 = vpop.permute.xlu0 %1775 }
 0x189   : > { %3244 = vmatmul.msk.bf16.gmra.mxu2 %vm2195_vm11, %v2160_v14  ;;  %v2135_v32 = vsel %vm2105_vm9, %v2102_v21, %v1776_v11 }
 0x18a   : > { %v2168_v40 = vsel %vm2138_vm10, %v2135_v32, %v1904_v30 }
 0x18b   : > { %3248 = vmatmul.msk.bf16.gmra.mxu3 %vm2195_vm11, %v2168_v40 }
 0x18e   : > { %v4877_v10 = vpop.permute.xlu2 %993 }
 0x18f   : > { %v1248_v7 = vpop.permute.xlu1 %1247 }
 0x190   : > { %v1240_v54 = vpop.permute.xlu0 %1239  ;;  %v2020_v29 = vsel %vm2006_vm6, %v4392_v41, %v1248_v7 }
 0x191   : > { %v2012_v57 = vsel %vm2006_vm6, %v4465_v9, %v1240_v54 }
 0x192   : > { %v2045_v33 = vsel %vm2039_vm7, %v2012_v57, %v1368_v47 }
 0x196   : > { %v2281_v62 = vpop.f32.mrf.mxu2  ;;  %v4898_v30 = vpop.permute.xlu2 %1385 }
 0x197   : > { %v1480_v28 = vpop.permute.xlu1 %1479  ;;  %v4863_v27 = vadd.f32 %v4860_v46, %v2281_v62 }
 0x198   : > { %v1376_v35 = vpop.permute.xlu0 %1375  ;;  %v2078_v38 = vsel %vm2072_vm8, %v2045_v33, %v1480_v28 }
 0x199   : > { %v3266_v12 = vmul.f32 -1.442695, %v4863_v27  ;;  %v2053_v23 = vsel %vm2039_vm7, %v2020_v29, %v1376_v35 }
 0x19a   : > { %v2086_v34 = vsel %vm2072_vm8, %v2053_v23, %v1488_v53 }
 0x19b   : > { %3521 = vpow2.f32 %v3266_v12 }
 0x19d   : > { %v2301_v39 = vpop.f32.mrf.mxu3 }
 0x19e   : > { %v4869_v63 = vadd.f32 %v4860_v46, %v2301_v39  ;;  %v2283_v22 = vpop.f32.mrf.mxu2  ;;  %v4928_v33 = vpop.permute.xlu2 %1505 }
 0x19f   : > { %v1760_v5 = vpop.permute.xlu1 %1759  ;;  %v4873_v48 = vadd.f32 %v4860_v46, %v2283_v22 }
 0x1a0   : > { %v3274_v19 = vmul.f32 -1.442695, %v4869_v63  ;;  %v1752_v58 = vpop.permute.xlu0 %1751  ;;  %v2119_v17 = vsel %vm2105_vm9, %v2086_v34, %v1760_v5 }
 0x1a1   : > { %v3522_v55 = vpop.eup %3521  ;;  %v3267_v9 = vmul.f32 -1.442695, %v4873_v48  ;;  %v2111_v45 = vsel %vm2105_vm9, %v2078_v38, %v1752_v58 }
 0x1a2   : > { %v2433_v31 = vadd.f32 1.0, %v3522_v55  ;;  %3523 = vpow2.f32 %v3274_v19  ;;  %v2144_v2 = vsel %vm2138_vm10, %v2111_v45, %v1880_v59 }
 0x1a3   : > { %3525 = vpow2.f32 %v3267_v9  ;;  %3236 = vmatmul.msk.bf16.gmra.mxu0 %vm2195_vm11, %v2144_v2 }
 0x1a4   : > { %3527 = vrcp.f32 %v2433_v31  ;;  %v2698_v8 = vand.u32 2147483647, %v2433_v31  ;;  %v2700_v44 = vand.u32 2147483648, %v2433_v31  ;;  %vm2694_vm13 = vweird.f32 %v2433_v31 }
 0x1a5   : > { %v2303_v15 = vpop.f32.mrf.mxu3 }
 0x1a6   : > { %v4887_v49 = vadd.f32 %v4860_v46, %v2303_v15  ;;  %vm2699_vm14 = vcmp.eq.f32.partialorder %v2698_v8, 8.507059e+37  ;;  %v2701_v40 = vor.u32 1.1754944e-38, %v2700_v44 }
 0x1a7   : > { %v986_v50 = vpop.permute.xlu1 %985 }
 0x1a8   : > { %v3524_v52 = vpop.eup %3523  ;;  %v3275_v42 = vmul.f32 -1.442695, %v4887_v49  ;;  %v1888_v0 = vpop.permute.xlu0 %1887  ;;  %v1997_v58 = vsel %vm1973_vm4, %v4408_v61, %v986_v50 }
 0x1a9   : > { %v3526_v41 = vpop.eup %3525  ;;  %v4892_v25 = vadd.f32 1.0, %v3524_v52  ;;  %v2152_v26 = vsel %vm2138_vm10, %v2119_v17, %v1888_v0 }
 0x1aa   : > { %v3528_v20 = vpop.eup %3527  ;;  %v4895_v3 = vadd.f32 1.0, %v3526_v41  ;;  %3529 = vpow2.f32 %v3275_v42  ;;  %3240 = vmatmul.msk.bf16.gmra.mxu1 %vm2195_vm11, %v2152_v26 }
 0x1ab   : > { %v2690_v18 = vmul.f32 %v3528_v20, %v2433_v31  ;;  %3531 = vrcp.f32 %v4892_v25  ;;  %vm2695_vm12 = vweird.f32 %v3528_v20  ;;  %v2818_v62 = vand.u32 2147483647, %v4892_v25 }
 0x1ac   : > { %3533 = vrcp.f32 %v4895_v3  ;;  %vm2696_vm15 = vmor %vm2694_vm13, %vm2695_vm12  ;;  %v2820_v12 = vand.u32 2147483648, %v4892_v25  ;;  %v2713_v57 = vand.u32 2147483647, %v4895_v3  ;;  %v2715_v5 = vand.u32 2147483648, %v4895_v3 }
 0x1ad   : > { %v2691_v60 = vsub.f32 1.0, %v2690_v18  ;;  %vm2814_vm0 = vweird.f32 %v4892_v25  ;;  %vm2709_vm2 = vweird.f32 %v4895_v3  ;;  %vm4939_vm12 = vcmp.eq.f32.partialorder %v2818_v62, 8.507059e+37 }
 0x1ae   : > { %v2261_v37 = vpop.f32.mrf.mxu1  ;;  %v2821_v23 = vor.u32 1.1754944e-38, %v2820_v12  ;;  %v2716_v52 = vor.u32 1.1754944e-38, %v2715_v5 }
 0x1af   : > { %v4903_v4 = vadd.f32 %v4860_v46, %v2261_v37  ;;  %v4905_v36 = vpop.permute.xlu1 %1265  ;;  %v2692_v47 = vmul.f32 %v3528_v20, %v2691_v60  ;;  %v2241_v16 = vpop.f32.mrf.mxu0 }
 0x1b0   : > { %v3530_v51 = vpop.eup %3529  ;;  %v4908_v1 = vadd.f32 %v4860_v46, %v2241_v16  ;;  %v1258_v6 = vpop.permute.xlu0 %1257 }
 0x1b1   : > { %v3258_v56 = vmul.f32 -1.442695, %v4903_v4  ;;  %v3532_v14 = vpop.eup %3531  ;;  %v2693_v21 = vadd.f32 %v3528_v20, %v2692_v47  ;;  %v4912_v11 = vadd.f32 1.0, %v3530_v51  ;;  %v2030_v41 = vsel %vm2006_vm6, %v1997_v58, %v1258_v6 }
 0x1b2   : > { %v3534_v32 = vpop.eup %3533  ;;  %v2810_v53 = vmul.f32 %v3532_v14, %v4892_v25  ;;  %v3250_v7 = vmul.f32 -1.442695, %v4908_v1  ;;  %vm2815_vm1 = vweird.f32 %v3532_v14 }
 0x1b3   : > { %3535 = vpow2.f32 %v3258_v56  ;;  %v2697_v54 = vsel %vm2696_vm15, %v3528_v20, %v2693_v21  ;;  %v2705_v28 = vmul.f32 %v3534_v32, %v4895_v3  ;;  %vm2710_vm5 = vweird.f32 %v3534_v32  ;;  %vm2816_vm13 = vmor %vm2814_vm0, %vm2815_vm1 }
 0x1b4   : > { %3537 = vrcp.f32 %v4912_v11  ;;  %v2702_v59 = vsel %vm2699_vm14, %v2701_v40, %v2697_v54  ;;  %v2811_v35 = vsub.f32 1.0, %v2810_v53  ;;  %vm2714_vm14 = vcmp.eq.f32.partialorder %v2713_v57, 8.507059e+37  ;;  %vm2711_vm15 = vmor %vm2709_vm2, %vm2710_vm5 }
 0x1b5   : > { %v2945_v39 = vmul.f32 %v2702_v59, %v4863_v27  ;;  %v2706_v22 = vsub.f32 1.0, %v2705_v28  ;;  %3539 = vpow2.f32 %v3250_v7  ;;  %v2835_v16 = vand.u32 2147483648, %v4912_v11 }
 0x1b6   : > { %v2263_v38 = vpop.f32.mrf.mxu1  ;;  %v2812_v19 = vmul.f32 %v3532_v14, %v2811_v35  ;;  %v2833_v56 = vand.u32 2147483647, %v4912_v11  ;;  %vm2829_vm1 = vweird.f32 %v4912_v11  ;;  %v2005_v53 = vsel %vm1973_vm4, %v4431_v43, %v4877_v10 }
 0x1b7   : > { %v1498_v55 = vpop.permute.xlu1 %1497  ;;  %2977 = vst.msk [vmem:[%s4922_s12 + $0x80] sm:$0xff] %vm1940_vm3, %v2945_v39  ;;  %v2707_v9 = vmul.f32 %v3534_v32, %v2706_v22  ;;  %v2243_v27 = vpop.f32.mrf.mxu0  ;;  %v4937_v45 = vadd.f32 %v4860_v46, %v2263_v38  ;;  %v2836_v7 = vor.u32 1.1754944e-38, %v2835_v16  ;;  %v2038_v35 = vsel %vm2006_vm6, %v2005_v53, %v4905_v36 }
 0x1b8   : > { %v2813_v2 = vadd.f32 %v3532_v14, %v2812_v19  ;;  %v4944_v61 = vadd.f32 %v4860_v46, %v2243_v27  ;;  %v1394_v15 = vpop.permute.xlu0 %1393  ;;  %vm2834_vm5 = vcmp.eq.f32.partialorder %v2833_v56, 8.507059e+37 }
 0x1b9   : > { %v3536_v31 = vpop.eup %3535  ;;  %v2708_v34 = vadd.f32 %v3534_v32, %v2707_v9  ;;  %v3259_v60 = vmul.f32 -1.442695, %v4937_v45  ;;  %v2071_v38 = vsel %vm2039_vm7, %v2038_v35, %v1394_v15 }
 0x1ba   : > { %v3538_v50 = vpop.eup %3537  ;;  %v4949_v17 = vadd.f32 1.0, %v3536_v31  ;;  %v2817_v42 = vsel %vm2816_vm13, %v3532_v14, %v2813_v2  ;;  %v3251_v26 = vmul.f32 -1.442695, %v4944_v61  ;;  %v2063_v14 = vsel %vm2039_vm7, %v2030_v41, %v4898_v30 }
 0x1bb   : > { %v2825_v0 = vmul.f32 %v3538_v50, %v4912_v11  ;;  %v3540_v20 = vpop.eup %3539  ;;  %v2822_v25 = vsel %vm4939_vm12, %v2821_v23, %v2817_v42  ;;  %v2712_v18 = vsel %vm2711_vm15, %v3534_v32, %v2708_v34  ;;  %vm2830_vm0 = vweird.f32 %v3538_v50 }
 0x1bc   : > { %3541 = vrcp.f32 %v4949_v17  ;;  %v2953_v3 = vmul.f32 %v2822_v25, %v4869_v63  ;;  %v2717_v8 = vsel %vm2714_vm14, %v2716_v52, %v2712_v18  ;;  %v4962_v44 = vadd.f32 1.0, %v3540_v20  ;;  %v1898_v63 = vpop.permute.xlu2 %1897  ;;  %vm2831_vm2 = vmor %vm2829_vm1, %vm2830_vm0 }
 0x1bd   : > { %v2826_v37 = vsub.f32 1.0, %v2825_v0  ;;  %v2946_v47 = vmul.f32 %v2717_v8, %v4873_v48  ;;  %3543 = vpow2.f32 %v3251_v26  ;;  %v2096_v21 = vsel %vm2072_vm8, %v2063_v14, %v1498_v55 }
 0x1be   : > { %2985 = vst.msk [vmem:[%s4922_s12 + $0xc0] sm:$0xff] %vm1940_vm3, %v2953_v3  ;;  %3545 = vrcp.f32 %v4962_v44  ;;  %v2580_v57 = vand.u32 2147483648, %v4949_v17  ;;  %v2578_v36 = vand.u32 2147483647, %v4949_v17  ;;  %v2458_v55 = vand.u32 2147483647, %v4962_v44 }
 0x1bf   : > { %v2827_v51 = vmul.f32 %v3538_v50, %v2826_v37  ;;  %v1778_v6 = vpop.permute.xlu1 %1777  ;;  %2978 = vst.msk [vmem:[%s4922_s12 + $0x88] sm:$0xff] %vm1940_vm3, %v2946_v47  ;;  %3547 = vpow2.f32 %v3259_v60  ;;  %vm2574_vm12 = vweird.f32 %v4949_v17  ;;  %v2460_v27 = vand.u32 2147483648, %v4962_v44 }
 0x1c0   : > { %v1770_v32 = vpop.permute.xlu0 %1769  ;;  %v2581_v2 = vor.u32 1.1754944e-38, %v2580_v57  ;;  %v2104_v29 = vsel %vm2072_vm8, %v2071_v38, %v4928_v33  ;;  %vm2579_vm15 = vcmp.eq.f32.partialorder %v2578_v36, 8.507059e+37  ;;  %vm2454_vm0 = vweird.f32 %v4962_v44 }
 0x1c1   : > { %v2828_v48 = vadd.f32 %v3538_v50, %v2827_v51  ;;  %v2129_v54 = vsel %vm2105_vm9, %v2096_v21, %v1770_v32  ;;  %v2137_v34 = vsel %vm2105_vm9, %v2104_v29, %v1778_v6  ;;  %v2461_v41 = vor.u32 1.1754944e-38, %v2460_v27 }
 0x1c2   : > { %v3542_v40 = vpop.eup %3541  ;;  %v2162_v28 = vsel %vm2138_vm10, %v2129_v54, %v1898_v63 }
 0x1c3   : > { %v2832_v62 = vsel %vm2831_vm2, %v3538_v50, %v2828_v48  ;;  %v2570_v30 = vmul.f32 %v3542_v40, %v4949_v17  ;;  %v3544_v11 = vpop.eup %3543  ;;  %3245 = vmatmul.msk.bf16.gmra.mxu2 %vm2195_vm11, %v2162_v28  ;;  %vm2575_vm4 = vweird.f32 %v3542_v40  ;;  %vm2459_vm2 = vcmp.eq.f32.partialorder %v2458_v55, 8.507059e+37 }
 0x1c4   : > { %v2837_v59 = vsel %vm2834_vm5, %v2836_v7, %v2832_v62  ;;  %v3546_v12 = vpop.eup %3545  ;;  %v4987_v39 = vadd.f32 1.0, %v3544_v11  ;;  %vm2576_vm14 = vmor %vm2574_vm12, %vm2575_vm4  ;;  %v1250_v50 = vpop.permute.xlu2 %1249 }
 0x1c5   : > { %v2954_v43 = vmul.f32 %v2837_v59, %v4887_v49  ;;  %v2571_v10 = vsub.f32 1.0, %v2570_v30  ;;  %v3548_v22 = vpop.eup %3547  ;;  %v2450_v5 = vmul.f32 %v3546_v12, %v4962_v44  ;;  %vm2455_vm13 = vweird.f32 %v3546_v12 }
 0x1c6   : > { %3549 = vrcp.f32 %v4987_v39  ;;  %v4999_v9 = vadd.f32 1.0, %v3548_v22  ;;  %vm2456_vm1 = vmor %vm2454_vm0, %vm2455_vm13  ;;  %v2475_v44 = vand.u32 2147483648, %v4987_v39  ;;  %v2473_v51 = vand.u32 2147483647, %v4987_v39 }
 0x1c7   : > { %2986 = vst.msk [vmem:[%s4922_s12 + $0xc8] sm:$0xff] %vm1940_vm3, %v2954_v43  ;;  %v2572_v19 = vmul.f32 %v3542_v40, %v2571_v10  ;;  %v4995_v58 = vpop.permute.xlu1 %1241  ;;  %v2451_v49 = vsub.f32 1.0, %v2450_v5  ;;  %vm2469_vm4 = vweird.f32 %v4987_v39  ;;  %v2022_v57 = vsel %vm2006_vm6, %v4523_v24, %v1250_v50 }
 0x1c8   : > { %v1906_v23 = vpop.permute.xlu0 %1905  ;;  %3551 = vrcp.f32 %v4999_v9  ;;  %v2476_v14 = vor.u32 1.1754944e-38, %v2475_v44  ;;  %v2593_v32 = vand.u32 2147483647, %v4999_v9  ;;  %v2014_v36 = vsel %vm2006_vm6, %v4363_v13, %v4995_v58 }
 0x1c9   : > { %v2573_v31 = vadd.f32 %v3542_v40, %v2572_v19  ;;  %v2452_v15 = vmul.f32 %v3546_v12, %v2451_v49  ;;  %v2170_v17 = vsel %vm2138_vm10, %v2137_v34, %v1906_v23 }
 0x1ca   : > { %3249 = vmatmul.msk.bf16.gmra.mxu3 %vm2195_vm11, %v2170_v17 }
 0x1cb   : > { %v2577_v52 = vsel %vm2576_vm14, %v3542_v40, %v2573_v31  ;;  %v2453_v42 = vadd.f32 %v3546_v12, %v2452_v15  ;;  %vm2474_vm14 = vcmp.eq.f32.partialorder %v2473_v51, 8.507059e+37 }
 0x1cc   : > { %v2582_v0 = vsel %vm2579_vm15, %v2581_v2, %v2577_v52  ;;  %v3550_v33 = vpop.eup %3549  ;;  %v1482_v56 = vpop.permute.xlu2 %1481  ;;  %vm2589_vm15 = vweird.f32 %v4999_v9 }
 0x1cd   : > { %v2937_v26 = vmul.f32 %v2582_v0, %v4903_v4  ;;  %v2457_v20 = vsel %vm2456_vm1, %v3546_v12, %v2453_v42  ;;  %v2465_v25 = vmul.f32 %v3550_v33, %v4987_v39  ;;  %vm2470_vm5 = vweird.f32 %v3550_v33 }
 0x1ce   : > { %v2462_v18 = vsel %vm2459_vm2, %v2461_v41, %v2457_v20  ;;  %v3552_v3 = vpop.eup %3551  ;;  %vm2471_vm12 = vmor %vm2469_vm4, %vm2470_vm5  ;;  %vm2594_vm1 = vcmp.eq.f32.partialorder %v2593_v32, 8.507059e+37 }
 0x1cf   : > { %2969 = vst.msk [vmem:[%s4922_s12 + $0x40] sm:$0xff] %vm1940_vm3, %v2937_v26  ;;  %v1378_v60 = vpop.permute.xlu1 %1377  ;;  %v2929_v8 = vmul.f32 %v2462_v18, %v4908_v1  ;;  %v2466_v37 = vsub.f32 1.0, %v2465_v25  ;;  %v2585_v47 = vmul.f32 %v3552_v3, %v4999_v9  ;;  %v2595_v1 = vand.u32 2147483648, %v4999_v9 }
 0x1d0   : > { %v1370_v16 = vpop.permute.xlu0 %1369  ;;  %vm2590_vm13 = vweird.f32 %v3552_v3  ;;  %v2055_v5 = vsel %vm2039_vm7, %v2022_v57, %v1378_v60 }
 0x1d1   : > { %2961 = vst.msk [vmem:[%s4922_s12] sm:$0xff] %vm1940_vm3, %v2929_v8  ;;  %v2467_v4 = vmul.f32 %v3550_v33, %v2466_v37  ;;  %v2586_v6 = vsub.f32 1.0, %v2585_v47  ;;  %vm2591_vm0 = vmor %vm2589_vm15, %vm2590_vm13  ;;  %v2596_v35 = vor.u32 1.1754944e-38, %v2595_v1  ;;  %v2047_v49 = vsel %vm2039_vm7, %v2014_v36, %v1370_v16 }
 0x1d2   : > { %v2080_v13 = vsel %vm2072_vm8, %v2047_v49, %v1482_v56 }
 0x1d3   : > { %v2468_v63 = vadd.f32 %v3550_v33, %v2467_v4  ;;  %v2587_v21 = vmul.f32 %v3552_v3, %v2586_v6 }
 0x1d4   : > { %v2306_v48 = vpop.f32.mrf.mxu3  ;;  %v1762_v38 = vpop.permute.xlu2 %1761 }
 0x1d5   : > { %v5024_v40 = vadd.f32 %v4860_v46, %v2306_v48  ;;  %v2472_v53 = vsel %vm2471_vm12, %v3550_v33, %v2468_v63  ;;  %v2286_v7 = vpop.f32.mrf.mxu2  ;;  %v2588_v62 = vadd.f32 %v3552_v3, %v2587_v21 }
 0x1d6   : > { %v2477_v54 = vsel %vm2474_vm14, %v2476_v14, %v2472_v53  ;;  %v5028_v30 = vadd.f32 %v4860_v46, %v2286_v7 }
 0x1d7   : > { %v3276_v28 = vmul.f32 -1.442695, %v5024_v40  ;;  %v1754_v11 = vpop.permute.xlu1 %1753  ;;  %v2930_v59 = vmul.f32 %v2477_v54, %v4944_v61  ;;  %v2592_v12 = vsel %vm2591_vm0, %v3552_v3, %v2588_v62 }
 0x1d8   : > { %v3268_v43 = vmul.f32 -1.442695, %v5028_v30  ;;  %v1490_v10 = vpop.permute.xlu0 %1489  ;;  %v2597_v39 = vsel %vm2594_vm1, %v2596_v35, %v2592_v12  ;;  %v2113_v52 = vsel %vm2105_vm9, %v2080_v13, %v1754_v11 }
 0x1d9   : > { %3553 = vpow2.f32 %v3276_v28  ;;  %2962 = vst.msk [vmem:[%s4922_s12 + $0x8] sm:$0xff] %vm1940_vm3, %v2930_v59  ;;  %v2938_v22 = vmul.f32 %v2597_v39, %v4937_v45  ;;  %v2088_v61 = vsel %vm2072_vm8, %v2055_v5, %v1490_v10 }
 0x1da   : > { %3555 = vpow2.f32 %v3268_v43  ;;  %v2121_v9 = vsel %vm2105_vm9, %v2088_v61, %v1762_v38 }
 0x1db   : > { %2970 = vst.msk [vmem:[%s4922_s12 + $0x48] sm:$0xff] %vm1940_vm3, %v2938_v22 }
 0x1dc   : > { %v2308_v19 = vpop.f32.mrf.mxu3 }
 0x1dd   : > { %v5046_v24 = vadd.f32 %v4860_v46, %v2308_v19  ;;  %v2288_v55 = vpop.f32.mrf.mxu2 }
 0x1de   : > { %v5051_v27 = vadd.f32 %v4860_v46, %v2288_v55 }
 0x1df   : > { %v3554_v45 = vpop.eup %3553  ;;  %v3277_v31 = vmul.f32 -1.442695, %v5046_v24  ;;  %v1890_v2 = vpop.permute.xlu1 %1889 }
 0x1e0   : > { %v2443_v29 = vadd.f32 1.0, %v3554_v45  ;;  %v2154_v23 = vsel %vm2138_vm10, %v2121_v9, %v1890_v2  ;;  %v3556_v15 = vpop.eup %3555  ;;  %v3269_v58 = vmul.f32 -1.442695, %v5051_v27  ;;  %v1882_v50 = vpop.permute.xlu0 %1881 }
 0x1e1   : > { %3557 = vpow2.f32 %v3277_v31  ;;  %3241 = vmatmul.msk.bf16.gmra.mxu1 %vm2195_vm11, %v2154_v23  ;;  %v2435_v34 = vadd.f32 1.0, %v3556_v15  ;;  %v2146_v17 = vsel %vm2138_vm10, %v2113_v52, %v1882_v50 }
 0x1e2   : > { %3559 = vrcp.f32 %v2443_v29  ;;  %3237 = vmatmul.msk.bf16.gmra.mxu0 %vm2195_vm11, %v2146_v17  ;;  %v2848_v16 = vand.u32 2147483647, %v2443_v29  ;;  %v2850_v4 = vand.u32 2147483648, %v2443_v29  ;;  %vm2844_vm8 = vweird.f32 %v2443_v29 }
 0x1e3   : > { %3561 = vpow2.f32 %v3269_v58  ;;  %v2728_v47 = vand.u32 2147483647, %v2435_v34  ;;  %v2730_v56 = vand.u32 2147483648, %v2435_v34  ;;  %vm2724_vm7 = vweird.f32 %v2435_v34 }
 0x1e4   : > { %3563 = vrcp.f32 %v2435_v34  ;;  %vm2849_vm2 = vcmp.eq.f32.partialorder %v2848_v16, 8.507059e+37  ;;  %v2851_v7 = vor.u32 1.1754944e-38, %v2850_v4 }
 0x1e5   : > { %vm5077_vm10 = vcmp.eq.f32.partialorder %v2728_v47, 8.507059e+37  ;;  %v2731_v28 = vor.u32 1.1754944e-38, %v2730_v56 }
 0x1e6   : > { %v2246_v42 = vpop.f32.mrf.mxu0 }
 0x1e7   : > { %v3558_v0 = vpop.eup %3557  ;;  %v5062_v33 = vadd.f32 %v4860_v46, %v2246_v42 }
 0x1e8   : > { %v3560_v41 = vpop.eup %3559  ;;  %v5064_v26 = vadd.f32 1.0, %v3558_v0  ;;  %v2266_v18 = vpop.f32.mrf.mxu1 }
 0x1e9   : > { %v3562_v20 = vpop.eup %3561  ;;  %v2840_v25 = vmul.f32 %v3560_v41, %v2443_v29  ;;  %v3252_v8 = vmul.f32 -1.442695, %v5062_v33  ;;  %vm2845_vm6 = vweird.f32 %v3560_v41  ;;  %v5072_v63 = vadd.f32 %v4860_v46, %v2266_v18 }
 0x1ea   : > { %v3564_v60 = vpop.eup %3563  ;;  %v5066_v3 = vadd.f32 1.0, %v3562_v20  ;;  %3565 = vrcp.f32 %v5064_v26  ;;  %vm2846_vm11 = vmor %vm2844_vm8, %vm2845_vm6  ;;  %v2863_v61 = vand.u32 2147483647, %v5064_v26  ;;  %vm2859_vm13 = vweird.f32 %v5064_v26 }
 0x1eb   : > { %v2720_v37 = vmul.f32 %v3564_v60, %v2435_v34  ;;  %v2841_v44 = vsub.f32 1.0, %v2840_v25  ;;  %vm2725_vm9 = vweird.f32 %v3564_v60  ;;  %v3260_v54 = vmul.f32 -1.442695, %v5072_v63 }
 0x1ec   : > { %3567 = vrcp.f32 %v5066_v3  ;;  %vm2726_vm5 = vmor %vm2724_vm7, %vm2725_vm9  ;;  %v2745_v31 = vand.u32 2147483648, %v5066_v3  ;;  %v2743_v23 = vand.u32 2147483647, %v5066_v3  ;;  %vm2739_vm14 = vweird.f32 %v5066_v3 }
 0x1ed   : > { %v2721_v51 = vsub.f32 1.0, %v2720_v37  ;;  %v2842_v6 = vmul.f32 %v3560_v41, %v2841_v44  ;;  %3569 = vpow2.f32 %v3252_v8  ;;  %vm2864_vm1 = vcmp.eq.f32.partialorder %v2863_v61, 8.507059e+37 }
 0x1ee   : > { %v2248_v14 = vpop.f32.mrf.mxu0  ;;  %3571 = vpow2.f32 %v3260_v54  ;;  %v2746_v52 = vor.u32 1.1754944e-38, %v2745_v31  ;;  %vm2744_vm6 = vcmp.eq.f32.partialorder %v2743_v23, 8.507059e+37 }
 0x1ef   : > { %v2722_v1 = vmul.f32 %v3564_v60, %v2721_v51  ;;  %v2843_v48 = vadd.f32 %v3560_v41, %v2842_v6  ;;  %v5075_v21 = vadd.f32 %v4860_v46, %v2248_v14 }
 0x1f0   : > { %v3566_v32 = vpop.eup %3565  ;;  %v2268_v35 = vpop.f32.mrf.mxu1 }
 0x1f1   : > { %v2723_v62 = vadd.f32 %v3564_v60, %v2722_v1  ;;  %v2847_v11 = vsel %vm2846_vm11, %v3560_v41, %v2843_v48  ;;  %v2855_v59 = vmul.f32 %v3566_v32, %v5064_v26  ;;  %v3253_v10 = vmul.f32 -1.442695, %v5075_v21 }
 0x1f2   : > { %v3568_v12 = vpop.eup %3567  ;;  %v2852_v43 = vsel %vm2849_vm2, %v2851_v7, %v2847_v11  ;;  %v5087_v57 = vadd.f32 %v4860_v46, %v2268_v35  ;;  %vm2860_vm4 = vweird.f32 %v3566_v32 }
 0x1f3   : > { %v2727_v39 = vsel %vm2726_vm5, %v3564_v60, %v2723_v62  ;;  %v2955_v22 = vmul.f32 %v2852_v43, %v5024_v40  ;;  %v2735_v5 = vmul.f32 %v3568_v12, %v5066_v3  ;;  %v3570_v38 = vpop.eup %3569  ;;  %v2856_v36 = vsub.f32 1.0, %v2855_v59  ;;  %vm2861_vm15 = vmor %vm2859_vm13, %vm2860_vm4 }
 0x1f4   : > { %v2732_v19 = vsel %vm5077_vm10, %v2731_v28, %v2727_v39  ;;  %3573 = vpow2.f32 %v3253_v10  ;;  %v3261_v49 = vmul.f32 -1.442695, %v5087_v57  ;;  %v2865_v40 = vand.u32 2147483648, %v5064_v26  ;;  %v3572_v15 = vpop.eup %3571 }
 0x1f5   : > { %v2947_v55 = vmul.f32 %v2732_v19, %v5028_v30  ;;  %2987 = vst.msk [vmem:[%s4922_s12 + $0xd0] sm:$0xff] %vm1940_vm3, %v2955_v22  ;;  %v2736_v45 = vsub.f32 1.0, %v2735_v5  ;;  %v2419_v9 = vadd.f32 1.0, %v3570_v38  ;;  %v2857_v2 = vmul.f32 %v3566_v32, %v2856_v36 }
 0x1f6   : > { %3575 = vpow2.f32 %v3261_v49  ;;  %vm2740_vm12 = vweird.f32 %v3568_v12  ;;  %v2866_v58 = vor.u32 1.1754944e-38, %v2865_v40  ;;  %v2427_v50 = vadd.f32 1.0, %v3572_v15 }
 0x1f7   : > { %2979 = vst.msk [vmem:[%s4922_s12 + $0x90] sm:$0xff] %vm1940_vm3, %v2947_v55  ;;  %v2737_v29 = vmul.f32 %v3568_v12, %v2736_v45  ;;  %3577 = vrcp.f32 %v2419_v9  ;;  %v2858_v30 = vadd.f32 %v3566_v32, %v2857_v2  ;;  %vm2741_vm0 = vmor %vm2739_vm14, %vm2740_vm12  ;;  %v2488_v47 = vand.u32 2147483647, %v2419_v9 }
 0x1f8   : > { %3579 = vrcp.f32 %v2427_v50  ;;  %v2490_v16 = vand.u32 2147483648, %v2419_v9  ;;  %vm2484_vm8 = vweird.f32 %v2419_v9  ;;  %v2608_v56 = vand.u32 2147483647, %v2427_v50 }
 0x1f9   : > { %v2738_v13 = vadd.f32 %v3568_v12, %v2737_v29  ;;  %v2862_v17 = vsel %vm2861_vm15, %v3566_v32, %v2858_v30  ;;  %vm2489_vm10 = vcmp.eq.f32.partialorder %v2488_v47, 8.507059e+37  ;;  %v2610_v1 = vand.u32 2147483648, %v2427_v50 }
 0x1fa   : > { %v3574_v34 = vpop.eup %3573  ;;  %v2867_v0 = vsel %vm2864_vm1, %v2866_v58, %v2862_v17  ;;  %v2491_v14 = vor.u32 1.1754944e-38, %v2490_v16  ;;  %vm2604_vm2 = vweird.f32 %v2427_v50  ;;  %vm2609_vm5 = vcmp.eq.f32.partialorder %v2608_v56, 8.507059e+37 }
 0x1fb   : > { %v2742_v42 = vsel %vm2741_vm0, %v3568_v12, %v2738_v13  ;;  %v2956_v26 = vmul.f32 %v2867_v0, %v5046_v24  ;;  %v2420_v60 = vadd.f32 1.0, %v3574_v34  ;;  %v2611_v35 = vor.u32 1.1754944e-38, %v2610_v1 }
 0x1fc   : > { %v3576_v41 = vpop.eup %3575  ;;  %v2747_v20 = vsel %vm2744_vm6, %v2746_v52, %v2742_v42 }
 0x1fd   : > { %v3578_v25 = vpop.eup %3577  ;;  %v2948_v18 = vmul.f32 %v2747_v20, %v5051_v27  ;;  %v5107_v3 = vadd.f32 1.0, %v3576_v41  ;;  %2988 = vst.msk [vmem:[%s4922_s12 + $0xd8] sm:$0xff] %vm1940_vm3, %v2956_v26  ;;  %3581 = vrcp.f32 %v2420_v60  ;;  %v2503_v12 = vand.u32 2147483647, %v2420_v60 }
 0x1fe   : > { %v2480_v8 = vmul.f32 %v3578_v25, %v2419_v9  ;;  %v3580_v44 = vpop.eup %3579  ;;  %vm2485_vm7 = vweird.f32 %v3578_v25  ;;  %v2505_v43 = vand.u32 2147483648, %v2420_v60  ;;  %vm2499_vm14 = vweird.f32 %v2420_v60 }
 0x1ff   : > { %2980 = vst.msk [vmem:[%s4922_s12 + $0x98] sm:$0xff] %vm1940_vm3, %v2948_v18  ;;  %3583 = vrcp.f32 %v5107_v3  ;;  %v2600_v24 = vmul.f32 %v3580_v44, %v2427_v50  ;;  %vm2486_vm9 = vmor %vm2484_vm8, %vm2485_vm7  ;;  %vm2605_vm11 = vweird.f32 %v3580_v44  ;;  %v2625_v5 = vand.u32 2147483648, %v5107_v3 }
 0x200   : > { %v2481_v37 = vsub.f32 1.0, %v2480_v8  ;;  %vm2606_vm4 = vmor %vm2604_vm2, %vm2605_vm11  ;;  %v2506_v55 = vor.u32 1.1754944e-38, %v2505_v43  ;;  %vm2619_vm0 = vweird.f32 %v5107_v3  ;;  %vm2504_vm1 = vcmp.eq.f32.partialorder %v2503_v12, 8.507059e+37 }
 0x201   : > { %v2601_v27 = vsub.f32 1.0, %v2600_v24  ;;  %v2626_v31 = vor.u32 1.1754944e-38, %v2625_v5 }
 0x202   : > { %v2482_v4 = vmul.f32 %v3578_v25, %v2481_v37 }
 0x203   : > { %v3582_v6 = vpop.eup %3581  ;;  %v2602_v53 = vmul.f32 %v3580_v44, %v2601_v27 }
 0x204   : > { %v2483_v51 = vadd.f32 %v3578_v25, %v2482_v4  ;;  %v2495_v7 = vmul.f32 %v3582_v6, %v2420_v60  ;;  %vm2500_vm12 = vweird.f32 %v3582_v6 }
 0x205   : > { %v3584_v48 = vpop.eup %3583  ;;  %v2603_v11 = vadd.f32 %v3580_v44, %v2602_v53  ;;  %vm2501_vm15 = vmor %vm2499_vm14, %vm2500_vm12 }
 0x206   : > { %v2487_v32 = vsel %vm2486_vm9, %v3578_v25, %v2483_v51  ;;  %v2615_v62 = vmul.f32 %v3584_v48, %v5107_v3  ;;  %v2496_v59 = vsub.f32 1.0, %v2495_v7  ;;  %vm2620_vm13 = vweird.f32 %v3584_v48 }
 0x207   : > { %v2492_v54 = vsel %vm2489_vm10, %v2491_v14, %v2487_v32  ;;  %v2607_v39 = vsel %vm2606_vm4, %v3580_v44, %v2603_v11  ;;  %vm2621_vm6 = vmor %vm2619_vm0, %vm2620_vm13 }
 0x208   : > { %v2931_v28 = vmul.f32 %v2492_v54, %v5062_v33  ;;  %v2616_v10 = vsub.f32 1.0, %v2615_v62  ;;  %v2497_v22 = vmul.f32 %v3582_v6, %v2496_v59  ;;  %v2612_v61 = vsel %vm2609_vm5, %v2611_v35, %v2607_v39 }
 0x209   : > { %v2623_v33 = vand.u32 2147483647, %v5107_v3  ;;  %v2939_v19 = vmul.f32 %v2612_v61, %v5072_v63 }
 0x20a   : > { %2963 = vst.msk [vmem:[%s4922_s12 + $0x10] sm:$0xff] %vm1940_vm3, %v2931_v28  ;;  %v2617_v38 = vmul.f32 %v3584_v48, %v2616_v10  ;;  %v2498_v36 = vadd.f32 %v3582_v6, %v2497_v22 }
 0x20b   : > { %2971 = vst.msk [vmem:[%s4922_s12 + $0x50] sm:$0xff] %vm1940_vm3, %v2939_v19  ;;  %vm2624_vm7 = vcmp.eq.f32.partialorder %v2623_v33, 8.507059e+37 }
 0x20c   : > { %v2291_v49 = vpop.f32.mrf.mxu2  ;;  %v2618_v45 = vadd.f32 %v3584_v48, %v2617_v38  ;;  %v2502_v9 = vsel %vm2501_vm15, %v3582_v6, %v2498_v36 }
 0x20d   : > { %v5123_v40 = vadd.f32 %v4860_v46, %v2291_v49  ;;  %v2507_v63 = vsel %vm2504_vm1, %v2506_v55, %v2502_v9 }
 0x20e   : > { %v2622_v2 = vsel %vm2621_vm6, %v3584_v48, %v2618_v45  ;;  %v2311_v23 = vpop.f32.mrf.mxu3  ;;  %v2932_v15 = vmul.f32 %v2507_v63, %v5075_v21 }
 0x20f   : > { %v3270_v29 = vmul.f32 -1.442695, %v5123_v40  ;;  %v2627_v30 = vsel %vm2624_vm7, %v2626_v31, %v2622_v2  ;;  %v5130_v13 = vadd.f32 %v4860_v46, %v2311_v23 }
 0x210   : > { %v2940_v58 = vmul.f32 %v2627_v30, %v5087_v57  ;;  %2964 = vst.msk [vmem:[%s4922_s12 + $0x18] sm:$0xff] %vm1940_vm3, %v2932_v15 }
 0x211   : > { %3585 = vpow2.f32 %v3270_v29  ;;  %v3278_v50 = vmul.f32 -1.442695, %v5130_v13 }
 0x212   : > { %2972 = vst.msk [vmem:[%s4922_s12 + $0x58] sm:$0xff] %vm1940_vm3, %v2940_v58 }
 0x213   : > { %3587 = vpow2.f32 %v3278_v50 }
 0x214   : > { %v2293_v34 = vpop.f32.mrf.mxu2 }
 0x215   : > { %v5139_v52 = vadd.f32 %v4860_v46, %v2293_v34  ;;  %v5180_v34 = vld [vmem:[%s5306_s2] ss:$0 sm:$0xff] }
 0x216   : > { %v2313_v42 = vpop.f32.mrf.mxu3 }
 0x217   : > { %v3586_v17 = vpop.eup %3585  ;;  %v3271_v21 = vmul.f32 -1.442695, %v5139_v52  ;;  %v5143_v41 = vadd.f32 %v4860_v46, %v2313_v42 }
 0x218   : > { %v2437_v0 = vadd.f32 1.0, %v3586_v17 }
 0x219   : > { %3589 = vpow2.f32 %v3271_v21  ;;  %v3588_v57 = vpop.eup %3587  ;;  %v3279_v26 = vmul.f32 -1.442695, %v5143_v41 }
 0x21a   : > { %3591 = vrcp.f32 %v2437_v0  ;;  %v2445_v20 = vadd.f32 1.0, %v3588_v57  ;;  %v2758_v4 = vand.u32 2147483647, %v2437_v0  ;;  %v2760_v24 = vand.u32 2147483648, %v2437_v0 }
 0x21b   : > { %vm2754_vm9 = vweird.f32 %v2437_v0 }
 0x21c   : > { %3593 = vrcp.f32 %v2445_v20  ;;  %v2878_v1 = vand.u32 2147483647, %v2445_v20  ;;  %v2880_v32 = vand.u32 2147483648, %v2445_v20  ;;  %v2761_v7 = vor.u32 1.1754944e-38, %v2760_v24 }
 0x21d   : > { %3595 = vpow2.f32 %v3279_v26  ;;  %vm2759_vm2 = vcmp.eq.f32.partialorder %v2758_v4, 8.507059e+37  ;;  %vm2874_vm5 = vweird.f32 %v2445_v20 }
 0x21e   : > { %vm2879_vm4 = vcmp.eq.f32.partialorder %v2878_v1, 8.507059e+37  ;;  %v2881_v39 = vor.u32 1.1754944e-38, %v2880_v32 }
 0x21f   : > { %v3590_v25 = vpop.eup %3589 }
 0x220   : > { %v3592_v18 = vpop.eup %3591  ;;  %v5146_v60 = vadd.f32 1.0, %v3590_v25  ;;  %v2251_v8 = vpop.f32.mrf.mxu0 }
 0x221   : > { %v2750_v3 = vmul.f32 %v3592_v18, %v2437_v0  ;;  %v5150_v47 = vadd.f32 %v4860_v46, %v2251_v8  ;;  %vm2755_vm8 = vweird.f32 %v3592_v18 }
 0x222   : > { %3597 = vrcp.f32 %v5146_v60  ;;  %v3594_v37 = vpop.eup %3593  ;;  %vm2756_vm10 = vmor %vm2754_vm9, %vm2755_vm8  ;;  %v2773_v38 = vand.u32 2147483647, %v5146_v60  ;;  %v2775_v33 = vand.u32 2147483648, %v5146_v60  ;;  %vm2769_vm14 = vweird.f32 %v5146_v60 }
 0x223   : > { %v2751_v44 = vsub.f32 1.0, %v2750_v3  ;;  %v3596_v16 = vpop.eup %3595  ;;  %v2870_v51 = vmul.f32 %v3594_v37, %v2445_v20  ;;  %v3254_v6 = vmul.f32 -1.442695, %v5150_v47  ;;  %vm2875_vm11 = vweird.f32 %v3594_v37 }
 0x224   : > { %v5152_v56 = vadd.f32 1.0, %v3596_v16  ;;  %vm2876_vm12 = vmor %vm2874_vm5, %vm2875_vm11  ;;  %vm2774_vm0 = vcmp.eq.f32.partialorder %v2773_v38, 8.507059e+37  ;;  %v2776_v2 = vor.u32 1.1754944e-38, %v2775_v33 }
 0x225   : > { %v2752_v27 = vmul.f32 %v3592_v18, %v2751_v44  ;;  %v2871_v14 = vsub.f32 1.0, %v2870_v51 }
 0x226   : > { %3599 = vrcp.f32 %v5152_v56  ;;  %v2893_v30 = vand.u32 2147483647, %v5152_v56  ;;  %vm2889_vm6 = vweird.f32 %v5152_v56 }
 0x227   : > { %v2753_v48 = vadd.f32 %v3592_v18, %v2752_v27  ;;  %v2872_v54 = vmul.f32 %v3594_v37, %v2871_v14  ;;  %3601 = vpow2.f32 %v3254_v6  ;;  %v2271_v62 = vpop.f32.mrf.mxu1 }
 0x228   : > { %v3598_v53 = vpop.eup %3597  ;;  %v2253_v59 = vpop.f32.mrf.mxu0  ;;  %v5158_v43 = vadd.f32 %v4860_v46, %v2271_v62  ;;  %vm2894_vm8 = vcmp.eq.f32.partialorder %v2893_v30, 8.507059e+37 }
 0x229   : > { %v2757_v28 = vsel %vm2756_vm10, %v3592_v18, %v2753_v48  ;;  %v2765_v11 = vmul.f32 %v3598_v53, %v5146_v60  ;;  %v2873_v12 = vadd.f32 %v3594_v37, %v2872_v54  ;;  %v5162_v5 = vadd.f32 %v4860_v46, %v2253_v59 }
 0x22a   : > { %v2762_v35 = vsel %vm2759_vm2, %v2761_v7, %v2757_v28  ;;  %v3262_v19 = vmul.f32 -1.442695, %v5158_v43  ;;  %vm2770_vm13 = vweird.f32 %v3598_v53 }
 0x22b   : > { %v2949_v10 = vmul.f32 %v2762_v35, %v5123_v40  ;;  %v2766_v22 = vsub.f32 1.0, %v2765_v11  ;;  %v2877_v61 = vsel %vm2876_vm12, %v3594_v37, %v2873_v12  ;;  %v3255_v45 = vmul.f32 -1.442695, %v5162_v5  ;;  %vm2771_vm15 = vmor %vm2769_vm14, %vm2770_vm13 }
 0x22c   : > { %v3600_v36 = vpop.eup %3599  ;;  %v2882_v49 = vsel %vm2879_vm4, %v2881_v39, %v2877_v61  ;;  %3603 = vpow2.f32 %v3262_v19 }
 0x22d   : > { %2981 = vst.msk [vmem:[%s4922_s12 + $0xa0] sm:$0xff] %vm1940_vm3, %v2949_v10  ;;  %v2767_v55 = vmul.f32 %v3598_v53, %v2766_v22  ;;  %v3602_v40 = vpop.eup %3601  ;;  %v2957_v46 = vmul.f32 %v2882_v49, %v5130_v13  ;;  %v2885_v9 = vmul.f32 %v3600_v36, %v5152_v56  ;;  %3605 = vpow2.f32 %v3255_v45 }
 0x22e   : > { %v2421_v63 = vadd.f32 1.0, %v3602_v40  ;;  %v2895_v13 = vand.u32 2147483648, %v5152_v56  ;;  %vm2890_vm1 = vweird.f32 %v3600_v36 }
 0x22f   : > { %v2768_v31 = vadd.f32 %v3598_v53, %v2767_v55  ;;  %2989 = vst.msk [vmem:[%s4922_s12 + $0xe0] sm:$0xff] %vm1940_vm3, %v2957_v46  ;;  %v2886_v29 = vsub.f32 1.0, %v2885_v9  ;;  %v2273_v23 = vpop.f32.mrf.mxu1  ;;  %vm2891_vm7 = vmor %vm2889_vm6, %vm2890_vm1 }
 0x230   : > { %3607 = vrcp.f32 %v2421_v63  ;;  %v5183_v17 = vadd.f32 %v5180_v34, %v2273_v23  ;;  %v2896_v26 = vor.u32 1.1754944e-38, %v2895_v13  ;;  %v2520_v16 = vand.u32 2147483648, %v2421_v63 }
 0x231   : > { %v2772_v15 = vsel %vm2771_vm15, %v3598_v53, %v2768_v31  ;;  %v2887_v50 = vmul.f32 %v3600_v36, %v2886_v29  ;;  %v2518_v51 = vand.u32 2147483647, %v2421_v63  ;;  %vm2514_vm10 = vweird.f32 %v2421_v63 }
 0x232   : > { %v2777_v58 = vsel %vm2774_vm0, %v2776_v2, %v2772_v15  ;;  %v3604_v42 = vpop.eup %3603  ;;  %v3263_v57 = vmul.f32 -1.442695, %v5183_v17  ;;  %v2521_v48 = vor.u32 1.1754944e-38, %v2520_v16 }
 0x233   : > { %v2950_v21 = vmul.f32 %v2777_v58, %v5139_v52  ;;  %v2888_v0 = vadd.f32 %v3600_v36, %v2887_v50  ;;  %v3606_v20 = vpop.eup %3605  ;;  %v2429_v25 = vadd.f32 1.0, %v3604_v42  ;;  %vm2519_vm2 = vcmp.eq.f32.partialorder %v2518_v51, 8.507059e+37 }
 0x234   : > { %v2422_v60 = vadd.f32 1.0, %v3606_v20  ;;  %3609 = vpow2.f32 %v3263_v57 }
 0x235   : > { %2982 = vst.msk [vmem:[%s4922_s12 + $0xa8] sm:$0xff] %vm1940_vm3, %v2950_v21  ;;  %v2892_v18 = vsel %vm2891_vm7, %v3600_v36, %v2888_v0  ;;  %3611 = vrcp.f32 %v2429_v25  ;;  %v2638_v54 = vand.u32 2147483647, %v2429_v25  ;;  %v2640_v62 = vand.u32 2147483648, %v2429_v25 }
 0x236   : > { %v3608_v3 = vpop.eup %3607  ;;  %v2897_v8 = vsel %vm2894_vm8, %v2896_v26, %v2892_v18  ;;  %3613 = vrcp.f32 %v2422_v60  ;;  %v2533_v35 = vand.u32 2147483647, %v2422_v60  ;;  %v2535_v12 = vand.u32 2147483648, %v2422_v60 }
 0x237   : > { %v2958_v52 = vmul.f32 %v2897_v8, %v5143_v41  ;;  %v2510_v37 = vmul.f32 %v3608_v3, %v2421_v63  ;;  %vm2515_vm9 = vweird.f32 %v3608_v3  ;;  %vm2634_vm4 = vweird.f32 %v2429_v25 }
 0x238   : > { %vm2516_vm11 = vmor %vm2514_vm10, %vm2515_vm9  ;;  %vm2639_vm14 = vcmp.eq.f32.partialorder %v2638_v54, 8.507059e+37  ;;  %v2641_v61 = vor.u32 1.1754944e-38, %v2640_v62  ;;  %vm2529_vm15 = vweird.f32 %v2422_v60  ;;  %vm2534_vm1 = vcmp.eq.f32.partialorder %v2533_v35, 8.507059e+37 }
 0x239   : > { %2990 = vst.msk [vmem:[%s4922_s12 + $0xe8] sm:$0xff] %vm1940_vm3, %v2958_v52  ;;  %v2511_v44 = vsub.f32 1.0, %v2510_v37  ;;  %v2536_v36 = vor.u32 1.1754944e-38, %v2535_v12 }
 0x23a   : > { %v3610_v4 = vpop.eup %3609 }
 0x23b   : > { %v2512_v24 = vmul.f32 %v3608_v3, %v2511_v44  ;;  %v3612_v27 = vpop.eup %3611  ;;  %v2430_v56 = vadd.f32 1.0, %v3610_v4 }
 0x23c   : > { %v2630_v14 = vmul.f32 %v3612_v27, %v2429_v25  ;;  %v3614_v1 = vpop.eup %3613  ;;  %vm2635_vm5 = vweird.f32 %v3612_v27 }
 0x23d   : > { %v2513_v6 = vadd.f32 %v3608_v3, %v2512_v24  ;;  %3615 = vrcp.f32 %v2430_v56  ;;  %v2525_v53 = vmul.f32 %v3614_v1, %v2422_v60  ;;  %vm2530_vm12 = vweird.f32 %v3614_v1  ;;  %vm2636_vm13 = vmor %vm2634_vm4, %vm2635_vm5 }
 0x23e   : > { %v2631_v32 = vsub.f32 1.0, %v2630_v14  ;;  %vm2531_vm0 = vmor %vm2529_vm15, %vm2530_vm12  ;;  %v2653_v31 = vand.u32 2147483647, %v2430_v56  ;;  %v2655_v63 = vand.u32 2147483648, %v2430_v56  ;;  %vm2649_vm7 = vweird.f32 %v2430_v56 }
 0x23f   : > { %v2517_v41 = vsel %vm2516_vm11, %v3608_v3, %v2513_v6  ;;  %v2526_v59 = vsub.f32 1.0, %v2525_v53 }
 0x240   : > { %v2522_v7 = vsel %vm2519_vm2, %v2521_v48, %v2517_v41  ;;  %v2632_v11 = vmul.f32 %v3612_v27, %v2631_v32  ;;  %v2656_v15 = vor.u32 1.1754944e-38, %v2655_v63  ;;  %vm2654_vm9 = vcmp.eq.f32.partialorder %v2653_v31, 8.507059e+37 }
 0x241   : > { %v2933_v28 = vmul.f32 %v2522_v7, %v5150_v47  ;;  %v2527_v39 = vmul.f32 %v3614_v1, %v2526_v59 }
 0x242   : > { %v2633_v10 = vadd.f32 %v3612_v27, %v2632_v11 }
 0x243   : > { %2965 = vst.msk [vmem:[%s4922_s12 + $0x20] sm:$0xff] %vm1940_vm3, %v2933_v28  ;;  %v3616_v22 = vpop.eup %3615  ;;  %v2528_v33 = vadd.f32 %v3614_v1, %v2527_v39 }
 0x244   : > { %v2637_v38 = vsel %vm2636_vm13, %v3612_v27, %v2633_v10  ;;  %v2645_v47 = vmul.f32 %v3616_v22, %v2430_v56  ;;  %vm2650_vm6 = vweird.f32 %v3616_v22 }
 0x245   : > { %v2642_v19 = vsel %vm2639_vm14, %v2641_v61, %v2637_v38  ;;  %v2532_v45 = vsel %vm2531_vm0, %v3614_v1, %v2528_v33  ;;  %vm2651_vm8 = vmor %vm2649_vm7, %vm2650_vm6 }
 0x246   : > { %v2296_v49 = vpop.f32.mrf.mxu2  ;;  %v2941_v55 = vmul.f32 %v2642_v19, %v5158_v43  ;;  %v2646_v40 = vsub.f32 1.0, %v2645_v47  ;;  %v2537_v9 = vsel %vm2534_vm1, %v2536_v36, %v2532_v45 }
 0x247   : > { %v5198_v46 = vadd.f32 %v5180_v34, %v2296_v49  ;;  %v2934_v2 = vmul.f32 %v2537_v9, %v5162_v5 }
 0x248   : > { %2973 = vst.msk [vmem:[%s4922_s12 + $0x60] sm:$0xff] %vm1940_vm3, %v2941_v55  ;;  %v2647_v29 = vmul.f32 %v3616_v22, %v2646_v40 }
 0x249   : > { %v3272_v23 = vmul.f32 -1.442695, %v5198_v46  ;;  %2966 = vst.msk [vmem:[%s4922_s12 + $0x28] sm:$0xff] %vm1940_vm3, %v2934_v2 }
 0x24a   : > { %v2648_v43 = vadd.f32 %v3616_v22, %v2647_v29 }
 0x24b   : > { %3617 = vpow2.f32 %v3272_v23 }
 0x24c   : > { %v2652_v30 = vsel %vm2651_vm8, %v3616_v22, %v2648_v43 }
 0x24d   : > { %v2657_v13 = vsel %vm2654_vm9, %v2656_v15, %v2652_v30  ;;  %v2316_v58 = vpop.f32.mrf.mxu3 }
 0x24e   : > { %v2298_v50 = vpop.f32.mrf.mxu2  ;;  %v2942_v21 = vmul.f32 %v2657_v13, %v5183_v17  ;;  %v5208_v5 = vadd.f32 %v5180_v34, %v2316_v58 }
 0x24f   : > { %v5211_v42 = vadd.f32 %v5180_v34, %v2298_v50 }
 0x250   : > { %2974 = vst.msk [vmem:[%s4922_s12 + $0x68] sm:$0xff] %vm1940_vm3, %v2942_v21  ;;  %v3280_v57 = vmul.f32 -1.442695, %v5208_v5 }
 0x251   : > { %v3618_v0 = vpop.eup %3617  ;;  %v3273_v20 = vmul.f32 -1.442695, %v5211_v42 }
 0x252   : > { %v2439_v26 = vadd.f32 1.0, %v3618_v0  ;;  %3619 = vpow2.f32 %v3280_v57 }
 0x254   : > { %3621 = vrcp.f32 %v2439_v26  ;;  %v2790_v24 = vand.u32 2147483648, %v2439_v26  ;;  %v2788_v56 = vand.u32 2147483647, %v2439_v26  ;;  %vm2784_vm11 = vweird.f32 %v2439_v26 }
 0x255   : > { %3623 = vpow2.f32 %v3273_v20  ;;  %v2318_v25 = vpop.f32.mrf.mxu3 }
 0x256   : > { %v5218_v17 = vadd.f32 %v5180_v34, %v2318_v25  ;;  %v2791_v53 = vor.u32 1.1754944e-38, %v2790_v24  ;;  %vm2789_vm5 = vcmp.eq.f32.partialorder %v2788_v56, 8.507059e+37 }
 0x258   : > { %v3620_v18 = vpop.eup %3619  ;;  %v3281_v60 = vmul.f32 -1.442695, %v5218_v17 }
 0x259   : > { %v2447_v8 = vadd.f32 1.0, %v3620_v18 }
 0x25a   : > { %v3622_v3 = vpop.eup %3621  ;;  %3625 = vpow2.f32 %v3281_v60 }
 0x25b   : > { %v3624_v52 = vpop.eup %3623  ;;  %v2780_v37 = vmul.f32 %v3622_v3, %v2439_v26  ;;  %3627 = vrcp.f32 %v2447_v8  ;;  %vm2785_vm10 = vweird.f32 %v3622_v3  ;;  %v2908_v59 = vand.u32 2147483647, %v2447_v8 }
 0x25c   : > { %v5221_v16 = vadd.f32 1.0, %v3624_v52  ;;  %vm2786_vm2 = vmor %vm2784_vm11, %vm2785_vm10  ;;  %v2910_v39 = vand.u32 2147483648, %v2447_v8  ;;  %vm2904_vm12 = vweird.f32 %v2447_v8 }
 0x25d   : > { %v2781_v44 = vsub.f32 1.0, %v2780_v37  ;;  %vm5242_vm13 = vcmp.eq.f32.partialorder %v2908_v59, 8.507059e+37 }
 0x25e   : > { %v2276_v4 = vpop.f32.mrf.mxu1  ;;  %3629 = vrcp.f32 %v5221_v16  ;;  %v2911_v45 = vor.u32 1.1754944e-38, %v2910_v39  ;;  %v2805_v40 = vand.u32 2147483648, %v5221_v16  ;;  %v2803_v2 = vand.u32 2147483647, %v5221_v16 }
 0x25f   : > { %v5224_v51 = vadd.f32 %v5180_v34, %v2276_v4  ;;  %v2782_v27 = vmul.f32 %v3622_v3, %v2781_v44  ;;  %v2256_v6 = vpop.f32.mrf.mxu0  ;;  %vm2799_vm0 = vweird.f32 %v5221_v16 }
 0x260   : > { %v3626_v1 = vpop.eup %3625  ;;  %v5229_v41 = vadd.f32 %v5180_v34, %v2256_v6  ;;  %v2806_v21 = vor.u32 1.1754944e-38, %v2805_v40  ;;  %vm2804_vm6 = vcmp.eq.f32.partialorder %v2803_v2, 8.507059e+37 }
 0x261   : > { %v3264_v14 = vmul.f32 -1.442695, %v5224_v51  ;;  %v2783_v48 = vadd.f32 %v3622_v3, %v2782_v27  ;;  %v3628_v32 = vpop.eup %3627  ;;  %v5231_v7 = vadd.f32 1.0, %v3626_v1 }
 0x262   : > { %v2900_v62 = vmul.f32 %v3628_v32, %v2447_v8  ;;  %v3256_v28 = vmul.f32 -1.442695, %v5229_v41  ;;  %vm2905_vm4 = vweird.f32 %v3628_v32 }
 0x263   : > { %3631 = vpow2.f32 %v3264_v14  ;;  %v2787_v54 = vsel %vm2786_vm2, %v3622_v3, %v2783_v48  ;;  %vm2906_vm14 = vmor %vm2904_vm12, %vm2905_vm4  ;;  %v2925_v20 = vand.u32 2147483648, %v5231_v7  ;;  %vm2919_vm8 = vweird.f32 %v5231_v7 }
 0x264   : > { %v2792_v11 = vsel %vm2789_vm5, %v2791_v53, %v2787_v54  ;;  %3633 = vrcp.f32 %v5231_v7  ;;  %v3630_v35 = vpop.eup %3629  ;;  %v2901_v10 = vsub.f32 1.0, %v2900_v62 }
 0x265   : > { %v2951_v12 = vmul.f32 %v2792_v11, %v5198_v46  ;;  %3635 = vpow2.f32 %v3256_v28  ;;  %v2795_v61 = vmul.f32 %v3630_v35, %v5221_v16  ;;  %vm2800_vm15 = vweird.f32 %v3630_v35 }
 0x266   : > { %v2278_v22 = vpop.f32.mrf.mxu1  ;;  %v2902_v33 = vmul.f32 %v3628_v32, %v2901_v10  ;;  %vm2801_vm1 = vmor %vm2799_vm0, %vm2800_vm15  ;;  %v2926_v37 = vor.u32 1.1754944e-38, %v2925_v20 }
 0x267   : > { %v5238_v38 = vadd.f32 %v5180_v34, %v2278_v22  ;;  %2983 = vst.msk [vmem:[%s4922_s12 + $0xb0] sm:$0xff] %vm1940_vm3, %v2951_v12  ;;  %v2796_v36 = vsub.f32 1.0, %v2795_v61  ;;  %v2258_v9 = vpop.f32.mrf.mxu0 }
 0x268   : > { %v2903_v55 = vadd.f32 %v3628_v32, %v2902_v33  ;;  %v5259_v58 = vadd.f32 %v5180_v34, %v2258_v9  ;;  %v2923_v34 = vand.u32 2147483647, %v5231_v7 }
 0x269   : > { %v3632_v47 = vpop.eup %3631  ;;  %v3265_v49 = vmul.f32 -1.442695, %v5238_v38  ;;  %v2797_v63 = vmul.f32 %v3630_v35, %v2796_v36 }
 0x26a   : > { %v5248_v46 = vadd.f32 1.0, %v3632_v47  ;;  %v3634_v31 = vpop.eup %3633  ;;  %v2907_v23 = vsel %vm2906_vm14, %v3628_v32, %v2903_v55  ;;  %v3257_v60 = vmul.f32 -1.442695, %v5259_v58  ;;  %vm2924_vm10 = vcmp.eq.f32.partialorder %v2923_v34, 8.507059e+37 }
 0x26b   : > { %3637 = vpow2.f32 %v3265_v49  ;;  %v3636_v29 = vpop.eup %3635  ;;  %v2915_v43 = vmul.f32 %v3634_v31, %v5231_v7  ;;  %v2912_v15 = vsel %vm5242_vm13, %v2911_v45, %v2907_v23  ;;  %v2798_v30 = vadd.f32 %v3630_v35, %v2797_v63 }
 0x26c   : > { %3639 = vrcp.f32 %v5248_v46  ;;  %v5256_v13 = vadd.f32 1.0, %v3636_v29  ;;  %v2959_v50 = vmul.f32 %v2912_v15, %v5208_v5  ;;  %vm2920_vm7 = vweird.f32 %v3634_v31 }
 0x26d   : > { %v2916_v0 = vsub.f32 1.0, %v2915_v43  ;;  %v2802_v57 = vsel %vm2801_vm1, %v3630_v35, %v2798_v30  ;;  %vm2921_vm9 = vmor %vm2919_vm8, %vm2920_vm7  ;;  %v2670_v6 = vand.u32 2147483648, %v5248_v46  ;;  %v2668_v1 = vand.u32 2147483647, %v5248_v46 }
 0x26e   : > { %3641 = vrcp.f32 %v5256_v13  ;;  %2991 = vst.msk [vmem:[%s4922_s12 + $0xf0] sm:$0xff] %vm1940_vm3, %v2959_v50  ;;  %v2807_v26 = vsel %vm2804_vm6, %v2806_v21, %v2802_v57  ;;  %v2548_v53 = vand.u32 2147483647, %v5256_v13  ;;  %v2550_v7 = vand.u32 2147483648, %v5256_v13 }
 0x26f   : > { %v2917_v25 = vmul.f32 %v3634_v31, %v2916_v0  ;;  %v2952_v5 = vmul.f32 %v2807_v26, %v5211_v42  ;;  %3643 = vpow2.f32 %v3257_v60  ;;  %vm2664_vm2 = vweird.f32 %v5248_v46 }
 0x270   : > { %v2671_v28 = vor.u32 1.1754944e-38, %v2670_v6  ;;  %vm2669_vm12 = vcmp.eq.f32.partialorder %v2668_v1, 8.507059e+37  ;;  %vm2544_vm13 = vweird.f32 %v5256_v13  ;;  %v2551_v39 = vor.u32 1.1754944e-38, %v2550_v7 }
 0x271   : > { %v3638_v18 = vpop.eup %3637  ;;  %v2918_v8 = vadd.f32 %v3634_v31, %v2917_v25  ;;  %2984 = vst.msk [vmem:[%s4922_s12 + $0xb8] sm:$0xff] %vm1940_vm3, %v2952_v5  ;;  %vm2549_vm15 = vcmp.eq.f32.partialorder %v2548_v53, 8.507059e+37 }
 0x272   : > { %v3640_v3 = vpop.eup %3639  ;;  %v2432_v52 = vadd.f32 1.0, %v3638_v18 }
 0x273   : > { %v2660_v44 = vmul.f32 %v3640_v3, %v5248_v46  ;;  %v2922_v16 = vsel %vm2921_vm9, %v3634_v31, %v2918_v8  ;;  %vm2665_vm11 = vweird.f32 %v3640_v3 }
 0x274   : > { %3645 = vrcp.f32 %v2432_v52  ;;  %v3642_v4 = vpop.eup %3641  ;;  %v2927_v42 = vsel %vm2924_vm10, %v2926_v37, %v2922_v16  ;;  %vm2666_vm4 = vmor %vm2664_vm2, %vm2665_vm11  ;;  %v2685_v47 = vand.u32 2147483648, %v2432_v52  ;;  %v2683_v49 = vand.u32 2147483647, %v2432_v52 }
 0x275   : > { %v2661_v24 = vsub.f32 1.0, %v2660_v44  ;;  %v2960_v27 = vmul.f32 %v2927_v42, %v5218_v17  ;;  %v2540_v56 = vmul.f32 %v3642_v4, %v5256_v13  ;;  %v3644_v32 = vpop.eup %3643  ;;  %vm2545_vm5 = vweird.f32 %v3642_v4 }
 0x276   : > { %v2424_v11 = vadd.f32 1.0, %v3644_v32  ;;  %vm2546_vm14 = vmor %vm2544_vm13, %vm2545_vm5  ;;  %vm2679_vm1 = vweird.f32 %v2432_v52  ;;  %vm2684_vm7 = vcmp.eq.f32.partialorder %v2683_v49, 8.507059e+37 }
 0x277   : > { %v2662_v14 = vmul.f32 %v3640_v3, %v2661_v24  ;;  %2992 = vst.msk [vmem:[%s4922_s12 + $0xf8] sm:$0xff] %vm1940_vm3, %v2960_v27  ;;  %v2541_v48 = vsub.f32 1.0, %v2540_v56 }
 0x278   : > { %3647 = vrcp.f32 %v2424_v11  ;;  %v2565_v29 = vand.u32 2147483648, %v2424_v11  ;;  %vm2559_vm9 = vweird.f32 %v2424_v11 }
 0x279   : > { %v2663_v54 = vadd.f32 %v3640_v3, %v2662_v14  ;;  %v2542_v62 = vmul.f32 %v3642_v4, %v2541_v48 }
 0x27a   : > { %v3646_v17 = vpop.eup %3645  ;;  %v2566_v15 = vor.u32 1.1754944e-38, %v2565_v29 }
 0x27b   : > { %v2667_v59 = vsel %vm2666_vm4, %v3640_v3, %v2663_v54  ;;  %v2675_v35 = vmul.f32 %v3646_v17, %v2432_v52  ;;  %v2543_v12 = vadd.f32 %v3642_v4, %v2542_v62  ;;  %vm2680_vm0 = vweird.f32 %v3646_v17 }
 0x27c   : > { %v2672_v10 = vsel %vm2669_vm12, %v2671_v28, %v2667_v59  ;;  %vm2681_vm6 = vmor %vm2679_vm1, %vm2680_vm0 }
 0x27d   : > { %v2943_v22 = vmul.f32 %v2672_v10, %v5224_v51  ;;  %v2676_v61 = vsub.f32 1.0, %v2675_v35  ;;  %v2547_v33 = vsel %vm2546_vm14, %v3642_v4, %v2543_v12  ;;  %v2686_v51 = vor.u32 1.1754944e-38, %v2685_v47 }
 0x27e   : > { %v2552_v19 = vsel %vm2549_vm15, %v2551_v39, %v2547_v33  ;;  %v3648_v40 = vpop.eup %3647 }
 0x27f   : > { %2975 = vst.msk [vmem:[%s4922_s12 + $0x70] sm:$0xff] %vm1940_vm3, %v2943_v22  ;;  %v2677_v36 = vmul.f32 %v3646_v17, %v2676_v61  ;;  %v2935_v55 = vmul.f32 %v2552_v19, %v5229_v41  ;;  %v2555_v46 = vmul.f32 %v3648_v40, %v2424_v11  ;;  %vm2560_vm8 = vweird.f32 %v3648_v40 }
 0x280   : > { %v2563_v41 = vand.u32 2147483647, %v2424_v11  ;;  %vm2561_vm10 = vmor %vm2559_vm9, %vm2560_vm8 }
 0x281   : > { %v2678_v45 = vadd.f32 %v3646_v17, %v2677_v36  ;;  %2967 = vst.msk [vmem:[%s4922_s12 + $0x30] sm:$0xff] %vm1940_vm3, %v2935_v55  ;;  %v2556_v63 = vsub.f32 1.0, %v2555_v46 }
 0x282   : > { %vm2564_vm11 = vcmp.eq.f32.partialorder %v2563_v41, 8.507059e+37 }
 0x283   : > { %v2682_v9 = vsel %vm2681_vm6, %v3646_v17, %v2678_v45  ;;  %v2557_v23 = vmul.f32 %v3648_v40, %v2556_v63 }
 0x284   : > { %v2687_v31 = vsel %vm2684_vm7, %v2686_v51, %v2682_v9 }
 0x285   : > { %v2944_v2 = vmul.f32 %v2687_v31, %v5238_v38  ;;  %v2558_v43 = vadd.f32 %v3648_v40, %v2557_v23 }
 0x287   : > { %2976 = vst.msk [vmem:[%s4922_s12 + $0x78] sm:$0xff] %vm1940_vm3, %v2944_v2  ;;  %v2562_v30 = vsel %vm2561_vm10, %v3648_v40, %v2558_v43 }
 0x288   : > { %v2567_v13 = vsel %vm2564_vm11, %v2566_v15, %v2562_v30 }
 0x289   : > { %v2936_v50 = vmul.f32 %v2567_v13, %v5259_v58 }
 0x28b   : > { %2968 = vst.msk [vmem:[%s4922_s12 + $0x38] sm:$0xff] %vm1940_vm3, %v2936_v50 }
 0x28c PF: > { %s13_s14 = sadd.s32 1, %s3750_s14   ;;  %s5320_s12 = smov %s3746_s13 }
 0x28d   : > { %p10_p5 = scmp.ge.s32.totalorder %s13_s14, 4   ;;  %s5321_s13 = smov %s5323_s15 }
 0x28f   :  { %12 = sbr.rel (!%p10_p5) target bundleno = 2 (0x2), region = 65 }

</bundles_post_ra>
